<compile_context>
chip_gen: v7x
topology: tpu7x:2x2x1
jax: 0.10.0
libtpu: 0.0.40
codegen_flags: <defaults>
</compile_context>

<pallas_src>
import functools

import jax
import jax.numpy as jnp
from jax.experimental import pallas as pl
from jax.experimental.pallas import tpu as pltpu


def _round_up(a, b):
    return ((a + b - 1) // b) * b


def _softplus(x):
    # numerically stable softplus (2 EUP ops)
    return jnp.maximum(x, 0.0) + jnp.log(1.0 + jnp.exp(-jnp.abs(x)))


def _sigmoid(x):
    # exact: exp on EUP, one f32 divide; recip(inf)=0 handles large -x safely
    return 1.0 / (1.0 + jnp.exp(-x))


def _pick_tb(batch):
    """Batch tile per chip generation.

    v5e/v6e: single TensorCore -> one grid step for small batches (per-step
    pipeline overhead dominates at this problem size).
    v7x: two TensorCores -> keep >= 2 parallel grid steps so both get work.
    """
    try:
        kind = jax.devices()[0].device_kind.lower()
    except Exception:  # pragma: no cover - defensive
        kind = ""
    n_splits = 2 if "v7" in kind else 1
    per = -(-max(batch, 1) // n_splits)          # ceil divide
    tb = _round_up(per, 8)
    return max(8, min(tb, 1024))


def _decoder_kernel(hc_pad, out_pad,
                    x_ref, w_fused_ref, b_ih_ref, w_rh_ref, b_rh_ref,
                    w_ro_ref, b_out_ref, gmask_ref, colmask_ref, out_ref):
    f32 = jnp.float32
    bf16 = jnp.bfloat16

    x = x_ref[...]                                          # (TB, num_states) bf16

    # One MXU pass feeds both the hidden layer (fcih) and the signal logits
    # (inputs @ fixed_signalP); the two halves are 128-lane-tile aligned.
    fused = jnp.dot(x, w_fused_ref[...], preferred_element_type=f32)
    h = _softplus(fused[:, :hc_pad] + b_ih_ref[...])        # (TB, hc_pad)
    sig_logits = fused[:, hc_pad:hc_pad + out_pad]          # (TB, out_pad)
    # TODO(synk): nn.Dropout is identity at inference; no dropout applied.

    # h_ref = softplus(fchh_ref(h));  padded h columns hit zero weight rows.
    hr = _softplus(jnp.dot(h.astype(bf16), w_rh_ref[...],
                           preferred_element_type=f32) + b_rh_ref[...])

    # Fused lane-dense output logits:
    #   cols [0, num_signals)              : inputs @ fixed_signalP
    #   cols [num_signals, num_signals+gs) : fchr_ref(h_ref)
    #   remaining cols                     : zero padding (-> sigmoid 0.5, sliced off)
    logits = (sig_logits
              + jnp.dot(hr.astype(bf16), w_ro_ref[...], preferred_element_type=f32)
              + b_out_ref[...])
    slab = _sigmoid(logits)                                 # (TB, out_pad) f32

    # Per-group L1 sums via the precomputed block-diagonal mask (bf16 MXU pass).
    # Sigmoid outputs are non-negative, so the L1 norm needs no abs().
    gsum = jnp.dot(slab.astype(bf16), gmask_ref[...], preferred_element_type=f32)
    is_ref_col = colmask_ref[...] > 0.5                     # (1, out_pad), broadcasts
    denom = jnp.where(is_ref_col, jnp.maximum(gsum, 1e-12), 1.0)
    out_ref[...] = (slab * pl.reciprocal(denom, approx=True)).astype(out_ref.dtype)


def decoder_forward(inputs, kparams, num_groups, num_states, *, tb=None):
    """inputs: (B, num_states) float. Returns (signal_param, ref_param)."""
    B = inputs.shape[0]
    num_signals = kparams["num_signals"]
    gs = num_groups * num_states
    out_pad = kparams["out_pad"]
    hc_pad = kparams["hc_pad"]

    if tb is None:
        tb = _pick_tb(B)
    b_pad = _round_up(max(B, 1), tb)

    x = inputs.astype(jnp.bfloat16)
    if b_pad != B:
        x = jnp.zeros((b_pad, inputs.shape[1]), jnp.bfloat16).at[:B].set(x)

    resident = lambda i: (0, 0)          # constant block index -> VMEM-resident
    kernel = functools.partial(_decoder_kernel, hc_pad, out_pad)

    out = pl.pallas_call(
        kernel,
        out_shape=jax.ShapeDtypeStruct((b_pad, out_pad), jnp.bfloat16),
        grid=(b_pad // tb,),
        in_specs=[
            pl.BlockSpec((tb, inputs.shape[1]), lambda i: (i, 0)),  # x tile
            pl.BlockSpec(kparams["w_fused"].shape, resident),
            pl.BlockSpec(kparams["b_ih_pad"].shape, resident),
            pl.BlockSpec(kparams["w_rh_pad"].shape, resident),
            pl.BlockSpec(kparams["b_rh_pad"].shape, resident),
            pl.BlockSpec(kparams["w_ro_pad"].shape, resident),
            pl.BlockSpec(kparams["b_out_pad"].shape, resident),
            pl.BlockSpec(kparams["gmask"].shape, resident),
            pl.BlockSpec(kparams["col_mask"].shape, resident),
        ],
        out_specs=pl.BlockSpec((tb, out_pad), lambda i: (i, 0)),
        compiler_params=pltpu.CompilerParams(
            dimension_semantics=("parallel",)),
    )(x, kparams["w_fused"], kparams["b_ih_pad"], kparams["w_rh_pad"],
      kparams["b_rh_pad"], kparams["w_ro_pad"], kparams["b_out_pad"],
      kparams["gmask"], kparams["col_mask"])

    out = out[:B].astype(jnp.float32)
    signal_param = out[:, :num_signals]
    ref_param = out[:, num_signals:num_signals + gs].reshape(
        B, num_groups, num_states)
    return signal_param, ref_param


def make_params(key, num_states, num_signals, num_groups,
                hidden_sig, hidden_ref, hidden_comb):
    """Synthetic nn.Linear-style parameters, pre-transposed to (in, out).
    Matmul weights stored in bf16 (full-rate MXU); biases in f32."""
    ks = jax.random.split(key, 4)

    def lin(k, fan_in, fan_out):
        kw, kb = jax.random.split(k)
        bound = 1.0 / float(fan_in) ** 0.5
        w = jax.random.uniform(kw, (fan_in, fan_out), jnp.float32, -bound, bound)
        b = jax.random.uniform(kb, (1, fan_out), jnp.float32, -bound, bound)
        return w.astype(jnp.bfloat16), b

    w_ih, b_ih = lin(ks[0], num_states, hidden_comb)                 # fcih
    w_rh, b_rh = lin(ks[1], hidden_comb, hidden_ref)                 # fchh_ref
    w_ro, b_ro = lin(ks[2], hidden_ref, num_groups * num_states)     # fchr_ref
    # fchh_sig / fchs_sig exist in __init__ but are unused in forward().
    fixed_signalP = jax.random.normal(
        ks[3], (num_states, num_signals), jnp.float32).astype(jnp.bfloat16)
    return {"w_ih": w_ih, "b_ih": b_ih, "w_rh": w_rh, "b_rh": b_rh,
            "w_ro": w_ro, "b_ro": b_ro, "fixed_signalP": fixed_signalP}


def prepare_kernel_params(params, num_signals, num_groups, num_states):
    """One-time prep: fuse/pad weights into lane-dense tiles and precompute
    the block-diagonal group-sum mask so the kernel does no mask building."""
    gs = num_groups * num_states
    hidden_comb = params["w_ih"].shape[1]
    hidden_ref = params["w_rh"].shape[1]
    out_pad = _round_up(num_signals + gs, 128)
    hc_pad = _round_up(hidden_comb, 128)
    hr_pad = _round_up(hidden_ref, 128)
    ns = params["w_ih"].shape[0]

    # Fused RHS for the single x-matmul: [w_ih | pad | fixed_signalP | pad].
    w_fused = jnp.zeros((ns, hc_pad + out_pad), jnp.bfloat16)
    w_fused = w_fused.at[:, :hidden_comb].set(params["w_ih"])
    w_fused = w_fused.at[:, hc_pad:hc_pad + num_signals].set(params["fixed_signalP"])

    b_ih_pad = jnp.zeros((1, hc_pad), jnp.float32
                         ).at[:, :hidden_comb].set(params["b_ih"])
    # Zero rows beyond hidden_comb make the padded softplus(0) columns inert.
    w_rh_pad = jnp.zeros((hc_pad, hr_pad), jnp.bfloat16
                         ).at[:hidden_comb, :hidden_ref].set(params["w_rh"])
    b_rh_pad = jnp.zeros((1, hr_pad), jnp.float32
                         ).at[:, :hidden_ref].set(params["b_rh"])
    w_ro_pad = jnp.zeros((hr_pad, out_pad), jnp.bfloat16
                         ).at[:hidden_ref, num_signals:num_signals + gs].set(params["w_ro"])
    b_out_pad = jnp.zeros((1, out_pad), jnp.float32
                          ).at[:, num_signals:num_signals + gs].set(params["b_ro"])

    # Block-diagonal group-sum mask (entries exactly 0/1; bf16-safe).
    core = jnp.kron(jnp.eye(num_groups, dtype=jnp.float32),
                    jnp.ones((num_states, num_states), jnp.float32))
    gmask = jnp.zeros((out_pad, out_pad), jnp.float32)
    gmask = gmask.at[num_signals:num_signals + gs,
                     num_signals:num_signals + gs].set(core)
    col_mask = jnp.zeros((1, out_pad), jnp.float32
                         ).at[:, num_signals:num_signals + gs].set(1.0)

    return {"num_signals": num_signals, "hc_pad": hc_pad, "out_pad": out_pad,
            "w_fused": w_fused, "b_ih_pad": b_ih_pad,
            "w_rh_pad": w_rh_pad, "b_rh_pad": b_rh_pad,
            "w_ro_pad": w_ro_pad, "b_out_pad": b_out_pad,
            "gmask": gmask.astype(jnp.bfloat16), "col_mask": col_mask}


def reference_forward(inputs, params, num_groups, num_states):
    f32 = jnp.float32
    x = inputs.astype(f32)
    h = jax.nn.softplus(x @ params["w_ih"].astype(f32) + params["b_ih"])
    sig = jax.nn.sigmoid(x @ params["fixed_signalP"].astype(f32))
    h_ref = jax.nn.softplus(h @ params["w_rh"].astype(f32) + params["b_rh"])
    r = jax.nn.sigmoid(h_ref @ params["w_ro"].astype(f32) + params["b_ro"])
    r = r.reshape(r.shape[0], num_groups, num_states)
    denom = jnp.maximum(jnp.sum(jnp.abs(r), axis=2, keepdims=True), 1e-12)
    return sig, r / denom


if __name__ == "__main__":
    B = 256
    num_states, num_signals, num_groups = 8, 16, 4
    hidden_sig, hidden_ref, hidden_comb = 8, 16, 32   # hidden_sig unused in forward

    key = jax.random.PRNGKey(0)
    k_in, k_par = jax.random.split(key)
    # bf16-representable inputs so the kernel (bf16 matmul inputs) and the
    # f32 reference see identical input values.
    inputs = jax.random.normal(k_in, (B, num_states), jnp.float32)
    inputs = inputs.astype(jnp.bfloat16).astype(jnp.float32)

    params = make_params(k_par, num_states, num_signals, num_groups,
                         hidden_sig, hidden_ref, hidden_comb)
    kparams = prepare_kernel_params(params, num_signals, num_groups, num_states)

    sig_out, ref_out = decoder_forward(inputs, kparams, num_groups, num_states)
    sig_out = jax.block_until_ready(sig_out)
    ref_out = jax.block_until_ready(ref_out)

    sig_ref, ref_ref = reference_forward(inputs, params, num_groups, num_states)

    assert sig_out.shape == (B, num_signals)
    assert ref_out.shape == (B, num_groups, num_states)
    assert jnp.allclose(sig_out, sig_ref, atol=2e-2), \
        float(jnp.max(jnp.abs(sig_out - sig_ref)))
    assert jnp.allclose(ref_out, ref_ref, atol=2e-2), \
        float(jnp.max(jnp.abs(ref_out - ref_ref)))

    print("KERNEL_OK")
</pallas_src>

<mosaic_0001>
module attributes {stable_mosaic.version = 11 : i64} {
  func.func @_decoder_kernel(%arg0: i32, %arg1: memref<256x8xbf16, #tpu.memory_space<vmem>>, %arg2: memref<8x256xbf16, #tpu.memory_space<vmem>>, %arg3: memref<1x128xf32, #tpu.memory_space<vmem>>, %arg4: memref<128x128xbf16, #tpu.memory_space<vmem>>, %arg5: memref<1x128xf32, #tpu.memory_space<vmem>>, %arg6: memref<128x128xbf16, #tpu.memory_space<vmem>>, %arg7: memref<1x128xf32, #tpu.memory_space<vmem>>, %arg8: memref<128x128xbf16, #tpu.memory_space<vmem>>, %arg9: memref<1x128xf32, #tpu.memory_space<vmem>>, %arg10: memref<256x128xbf16, #tpu.memory_space<vmem>>) attributes {dimension_semantics = [#tpu.dimension_semantics<parallel>], iteration_bounds = array<i64: 1>, scalar_prefetch = 0 : i64, scratch_operands = 0 : i64, tpu.core_type = #tpu.core_type<tc>, window_params = [{transform_indices = @transform_0, window_bounds = array<i64: 256, 8>}, {pipeline_mode = #tpu.pipeline_mode<synchronous>, transform_indices = @transform_1, window_bounds = array<i64: 8, 256>}, {pipeline_mode = #tpu.pipeline_mode<synchronous>, transform_indices = @transform_2, window_bounds = array<i64: 1, 128>}, {pipeline_mode = #tpu.pipeline_mode<synchronous>, transform_indices = @transform_3, window_bounds = array<i64: 128, 128>}, {pipeline_mode = #tpu.pipeline_mode<synchronous>, transform_indices = @transform_4, window_bounds = array<i64: 1, 128>}, {pipeline_mode = #tpu.pipeline_mode<synchronous>, transform_indices = @transform_5, window_bounds = array<i64: 128, 128>}, {pipeline_mode = #tpu.pipeline_mode<synchronous>, transform_indices = @transform_6, window_bounds = array<i64: 1, 128>}, {pipeline_mode = #tpu.pipeline_mode<synchronous>, transform_indices = @transform_7, window_bounds = array<i64: 128, 128>}, {pipeline_mode = #tpu.pipeline_mode<synchronous>, transform_indices = @transform_8, window_bounds = array<i64: 1, 128>}, {transform_indices = @transform_9, window_bounds = array<i64: 256, 128>}]} {
    %c0 = arith.constant 0 : index
    %c0_0 = arith.constant 0 : index
    %0 = vector.load %arg1[%c0, %c0_0] : memref<256x8xbf16, #tpu.memory_space<vmem>>, vector<256x8xbf16>
    %c0_1 = arith.constant 0 : index
    %c0_2 = arith.constant 0 : index
    %1 = vector.load %arg2[%c0_1, %c0_2] : memref<8x256xbf16, #tpu.memory_space<vmem>>, vector<8x256xbf16>
    %cst = arith.constant dense<0.000000e+00> : vector<256x256xf32>
    %2 = tpu.matmul %0, %1, %cst {dimension_numbers = #tpu.dot_dimension_numbers<[1], [0], [0], [1], [0, 0, 1, 1], [], []>} : vector<256x8xbf16>, vector<8x256xbf16>, vector<256x256xf32> -> vector<256x256xf32>
    %3 = vector.extract_strided_slice %2 {offsets = [0, 0], sizes = [256, 128], strides = [1, 1]} : vector<256x256xf32> to vector<256x128xf32>
    %c0_3 = arith.constant 0 : index
    %c0_4 = arith.constant 0 : index
    %4 = vector.load %arg3[%c0_3, %c0_4] : memref<1x128xf32, #tpu.memory_space<vmem>>, vector<1x128xf32>
    %5 = vector.broadcast %4 : vector<1x128xf32> to vector<256x128xf32>
    %6 = arith.addf %3, %5 : vector<256x128xf32>
    %cst_5 = arith.constant 0.000000e+00 : f32
    %7 = vector.broadcast %cst_5 : f32 to vector<256x128xf32>
    %8 = arith.maximumf %6, %7 : vector<256x128xf32>
    %9 = math.absf %6 : vector<256x128xf32>
    %cst_6 = arith.constant 0.000000e+00 : f32
    %10 = vector.broadcast %cst_6 : f32 to vector<256x128xf32>
    %11 = arith.subf %10, %9 : vector<256x128xf32>
    %12 = math.exp %11 : vector<256x128xf32>
    %cst_7 = arith.constant 1.000000e+00 : f32
    %13 = vector.broadcast %cst_7 : f32 to vector<256x128xf32>
    %14 = arith.addf %13, %12 : vector<256x128xf32>
    %15 = math.log %14 : vector<256x128xf32>
    %16 = arith.addf %8, %15 : vector<256x128xf32>
    %17 = vector.extract_strided_slice %2 {offsets = [0, 128], sizes = [256, 128], strides = [1, 1]} : vector<256x256xf32> to vector<256x128xf32>
    %18 = arith.truncf %16 : vector<256x128xf32> to vector<256x128xbf16>
    %c0_8 = arith.constant 0 : index
    %c0_9 = arith.constant 0 : index
    %19 = vector.load %arg4[%c0_8, %c0_9] : memref<128x128xbf16, #tpu.memory_space<vmem>>, vector<128x128xbf16>
    %cst_10 = arith.constant dense<0.000000e+00> : vector<256x128xf32>
    %20 = tpu.matmul %18, %19, %cst_10 {dimension_numbers = #tpu.dot_dimension_numbers<[1], [0], [0], [1], [0, 0, 1, 1], [], []>} : vector<256x128xbf16>, vector<128x128xbf16>, vector<256x128xf32> -> vector<256x128xf32>
    %c0_11 = arith.constant 0 : index
    %c0_12 = arith.constant 0 : index
    %21 = vector.load %arg5[%c0_11, %c0_12] : memref<1x128xf32, #tpu.memory_space<vmem>>, vector<1x128xf32>
    %22 = vector.broadcast %21 : vector<1x128xf32> to vector<256x128xf32>
    %23 = arith.addf %20, %22 : vector<256x128xf32>
    %cst_13 = arith.constant 0.000000e+00 : f32
    %24 = vector.broadcast %cst_13 : f32 to vector<256x128xf32>
    %25 = arith.maximumf %23, %24 : vector<256x128xf32>
    %26 = math.absf %23 : vector<256x128xf32>
    %cst_14 = arith.constant 0.000000e+00 : f32
    %27 = vector.broadcast %cst_14 : f32 to vector<256x128xf32>
    %28 = arith.subf %27, %26 : vector<256x128xf32>
    %29 = math.exp %28 : vector<256x128xf32>
    %cst_15 = arith.constant 1.000000e+00 : f32
    %30 = vector.broadcast %cst_15 : f32 to vector<256x128xf32>
    %31 = arith.addf %30, %29 : vector<256x128xf32>
    %32 = math.log %31 : vector<256x128xf32>
    %33 = arith.addf %25, %32 : vector<256x128xf32>
    %34 = arith.truncf %33 : vector<256x128xf32> to vector<256x128xbf16>
    %c0_16 = arith.constant 0 : index
    %c0_17 = arith.constant 0 : index
    %35 = vector.load %arg6[%c0_16, %c0_17] : memref<128x128xbf16, #tpu.memory_space<vmem>>, vector<128x128xbf16>
    %cst_18 = arith.constant dense<0.000000e+00> : vector<256x128xf32>
    %36 = tpu.matmul %34, %35, %cst_18 {dimension_numbers = #tpu.dot_dimension_numbers<[1], [0], [0], [1], [0, 0, 1, 1], [], []>} : vector<256x128xbf16>, vector<128x128xbf16>, vector<256x128xf32> -> vector<256x128xf32>
    %37 = arith.addf %17, %36 : vector<256x128xf32>
    %c0_19 = arith.constant 0 : index
    %c0_20 = arith.constant 0 : index
    %38 = vector.load %arg7[%c0_19, %c0_20] : memref<1x128xf32, #tpu.memory_space<vmem>>, vector<1x128xf32>
    %39 = vector.broadcast %38 : vector<1x128xf32> to vector<256x128xf32>
    %40 = arith.addf %37, %39 : vector<256x128xf32>
    %cst_21 = arith.constant 0.000000e+00 : f32
    %41 = vector.broadcast %cst_21 : f32 to vector<256x128xf32>
    %42 = arith.subf %41, %40 : vector<256x128xf32>
    %43 = math.exp %42 : vector<256x128xf32>
    %cst_22 = arith.constant 1.000000e+00 : f32
    %44 = vector.broadcast %cst_22 : f32 to vector<256x128xf32>
    %45 = arith.addf %44, %43 : vector<256x128xf32>
    %cst_23 = arith.constant 1.000000e+00 : f32
    %46 = vector.broadcast %cst_23 : f32 to vector<256x128xf32>
    %47 = arith.divf %46, %45 : vector<256x128xf32>
    %48 = arith.truncf %47 : vector<256x128xf32> to vector<256x128xbf16>
    %c0_24 = arith.constant 0 : index
    %c0_25 = arith.constant 0 : index
    %49 = vector.load %arg8[%c0_24, %c0_25] : memref<128x128xbf16, #tpu.memory_space<vmem>>, vector<128x128xbf16>
    %cst_26 = arith.constant dense<0.000000e+00> : vector<256x128xf32>
    %50 = tpu.matmul %48, %49, %cst_26 {dimension_numbers = #tpu.dot_dimension_numbers<[1], [0], [0], [1], [0, 0, 1, 1], [], []>} : vector<256x128xbf16>, vector<128x128xbf16>, vector<256x128xf32> -> vector<256x128xf32>
    %c0_27 = arith.constant 0 : index
    %c0_28 = arith.constant 0 : index
    %51 = vector.load %arg9[%c0_27, %c0_28] : memref<1x128xf32, #tpu.memory_space<vmem>>, vector<1x128xf32>
    %cst_29 = arith.constant 5.000000e-01 : f32
    %52 = vector.broadcast %cst_29 : f32 to vector<1x128xf32>
    %53 = arith.cmpf ogt, %51, %52 : vector<1x128xf32>
    %cst_30 = arith.constant 9.99999996E-13 : f32
    %54 = vector.broadcast %cst_30 : f32 to vector<256x128xf32>
    %55 = arith.maximumf %50, %54 : vector<256x128xf32>
    %cst_31 = arith.constant 1.000000e+00 : f32
    %56 = vector.shape_cast %53 : vector<1x128xi1> to vector<1x128xi1>
    %57 = vector.broadcast %56 : vector<1x128xi1> to vector<256x128xi1>
    %58 = vector.broadcast %cst_31 : f32 to vector<256x128xf32>
    %59 = arith.select %57, %55, %58 : vector<256x128xi1>, vector<256x128xf32>
    %60 = tpu.reciprocal %59 {approx = true} : vector<256x128xf32> -> vector<256x128xf32>
    %61 = arith.mulf %47, %60 : vector<256x128xf32>
    %62 = arith.truncf %61 : vector<256x128xf32> to vector<256x128xbf16>
    %c0_32 = arith.constant 0 : index
    %c0_33 = arith.constant 0 : index
    %63 = vector.load %arg10[%c0_32, %c0_33] : memref<256x128xbf16, #tpu.memory_space<vmem>>, vector<256x128xbf16>
    tpu.vector_store %arg10[%c0_32, %c0_33], %62 {strides = array<i32>} : memref<256x128xbf16, #tpu.memory_space<vmem>>, vector<256x128xbf16>,
    return
  }
  func.func @transform_0(%arg0: i32) -> (i32, i32) {
    %c0_i32 = arith.constant 0 : i32
    %c0_i32_0 = arith.constant 0 : i32
    return %arg0, %c0_i32 : i32, i32
  }
  func.func @transform_1(%arg0: i32) -> (i32, i32) {
    %c0_i32 = arith.constant 0 : i32
    %c0_i32_0 = arith.constant 0 : i32
    %c0_i32_1 = arith.constant 0 : i32
    return %c0_i32, %c0_i32_0 : i32, i32
  }
  func.func @transform_2(%arg0: i32) -> (i32, i32) {
    %c0_i32 = arith.constant 0 : i32
    %c0_i32_0 = arith.constant 0 : i32
    %c0_i32_1 = arith.constant 0 : i32
    return %c0_i32, %c0_i32_0 : i32, i32
  }
  func.func @transform_3(%arg0: i32) -> (i32, i32) {
    %c0_i32 = arith.constant 0 : i32
    %c0_i32_0 = arith.constant 0 : i32
    %c0_i32_1 = arith.constant 0 : i32
    return %c0_i32, %c0_i32_0 : i32, i32
  }
  func.func @transform_4(%arg0: i32) -> (i32, i32) {
    %c0_i32 = arith.constant 0 : i32
    %c0_i32_0 = arith.constant 0 : i32
    %c0_i32_1 = arith.constant 0 : i32
    return %c0_i32, %c0_i32_0 : i32, i32
  }
  func.func @transform_5(%arg0: i32) -> (i32, i32) {
    %c0_i32 = arith.constant 0 : i32
    %c0_i32_0 = arith.constant 0 : i32
    %c0_i32_1 = arith.constant 0 : i32
    return %c0_i32, %c0_i32_0 : i32, i32
  }
  func.func @transform_6(%arg0: i32) -> (i32, i32) {
    %c0_i32 = arith.constant 0 : i32
    %c0_i32_0 = arith.constant 0 : i32
    %c0_i32_1 = arith.constant 0 : i32
    return %c0_i32, %c0_i32_0 : i32, i32
  }
  func.func @transform_7(%arg0: i32) -> (i32, i32) {
    %c0_i32 = arith.constant 0 : i32
    %c0_i32_0 = arith.constant 0 : i32
    %c0_i32_1 = arith.constant 0 : i32
    return %c0_i32, %c0_i32_0 : i32, i32
  }
  func.func @transform_8(%arg0: i32) -> (i32, i32) {
    %c0_i32 = arith.constant 0 : i32
    %c0_i32_0 = arith.constant 0 : i32
    %c0_i32_1 = arith.constant 0 : i32
    return %c0_i32, %c0_i32_0 : i32, i32
  }
  func.func @transform_9(%arg0: i32) -> (i32, i32) {
    %c0_i32 = arith.constant 0 : i32
    %c0_i32_0 = arith.constant 0 : i32
    return %arg0, %c0_i32 : i32, i32
  }
}

</mosaic_0001>

<bundles_post_ra>
// kernel: tpu_custom_call.1
= control target key start
LH: loop header
LB: loop body
LE: loop exit
PB: predicated region body
PF: predicated region fallthrough
CT: control target
= control target key end

     0   :  { %14 = vsyncpa [#allocation3], 0  ;;  %s4232_s0 = inlined_call_operand.vmem [shape: bf16[256,8], index: 0, kind: input, shape index: {}]   ;;  %s4233_s1 = inlined_call_operand.vmem [shape: bf16[8,256], index: 1, kind: input, shape index: {}]   ;;  %s4234_s2 = inlined_call_operand.vmem [shape: f32[1,128], index: 2, kind: input, shape index: {}]   ;;  %s4235_s3 = inlined_call_operand.vmem [shape: bf16[128,128], index: 3, kind: input, shape index: {}]   ;;  %s4236_s4 = inlined_call_operand.vmem [shape: f32[1,128], index: 4, kind: input, shape index: {}]   ;;  %s4237_s5 = inlined_call_operand.vmem [shape: bf16[128,128], index: 5, kind: input, shape index: {}]   ;;  %s4238_s6 = inlined_call_operand.vmem [shape: f32[1,128], index: 6, kind: input, shape index: {}]   ;;  %s4239_s7 = inlined_call_operand.hbm [shape: bf16[128,128], index: 7, kind: input, shape index: {}]   ;;  %s4240_s8 = inlined_call_operand.vmem [shape: f32[1,128], index: 8, kind: input, shape index: {}]   ;;  %s4241_s9 = inlined_call_operand.hbm [shape: bf16[256,128], index: 9, kind: output, shape index: {}]  }
   0x1   :  { %15 = vsyncpa [#allocation4], 0  ;;  %s3318_s30 = smov [#allocation2]   ;;  %s3270_s13 = scalar_lea.hbm %s4239_s7, 1024 }
   0x2   :  { %s35_s10 = sshll.u32 %s3318_s30, 4  ;;  %p3271_p0 = scmp.ne.s32.totalorder %s4239_s7, %s3270_s13  ;;  %s36_s10 = int_to_ptr.vmem [resolvable:$true] %s35_s10 }
   0x3   :  { %p3274_p1 = scmp.lt.u32.totalorder %s3270_s13, %s4239_s7 }
   0x5   :  { %p3276_p2 = pnand %p3274_p1, %p3271_p0 }
   0x7   :  { %3279 = shalt.err (!%p3276_p2)
}
   0x8   :  { %s3280_s18 = scalar_lea.vmem %s36_s10, 1024  ;;  %p3285_p4 = scmp.lt.s32.totalorder %s36_s10, %s36_s10 }
   0x9   :  { %p3281_p3 = scmp.ne.s32.totalorder %s36_s10, %s3280_s18  ;;  %p3286_p5 = scmp.lt.s32.totalorder %s3280_s18, %s3280_s18 }
   0xb   :  { %p3287_p6 = por %p3286_p5, %p3285_p4 }
   0xd   :  { %p3288_p7 = pnand %p3287_p6, %p3281_p3 }
   0xf   :  { %3291 = shalt.err (!%p3288_p7)
}
  0x10   :  { %s3319_s19 = smov 64   ;;  %s3320_s20 = smov 4  }
  0x11   :  { %41 = dma.hbm_to_vmem [thread:$0]  %s4239_s7, 1024, %s36_s10, [#allocation3], %s3319_s19, %s3319_s19, %s3320_s20  }
  0x12   :  { %3314 = dma.done.wait [#allocation3], 1024  }
  0x13   :  { %3315 = vsyncadd [#allocation3], 4294966272  ;;  %v4242_v0 = vmov 0   ;;  %v80_v1 = vld [vmem:[%s4233_s1] sm:$0xff]  ;;  %vm215_vm0 = vcmask 1043456   ;;  %vm166_vm1 = vcmask 64512  }
  0x14   :  { %254 = vmatprep.mubr.bf16.mxu0 %v4242_v0  ;;  %374 = vmatprep.mubr.bf16.mxu1 %v4242_v0  ;;  %v2353_v2 = vcombine.high %v80_v1, %v80_v1  ;;  %v2352_v3 = vcombine.low %v80_v1, %v80_v1  ;;  %v2782_v5 = vld [vmem:[%s4232_s0] sm:$0xff]   ;;  %v2783_v7 = vld [vmem:[%s4232_s0 + $0x8] sm:$0xff]   ;;  %v2784_v9 = vld [vmem:[%s4232_s0 + $0x10] sm:$0xff]  }
  0x15   :  { %v2789_v6 = vld [vmem:[%s4232_s0 + $0x60] sm:$0xff]   ;;  %v2791_v8 = vld [vmem:[%s4232_s0 + $0x68] sm:$0xff]   ;;  %v2793_v10 = vld [vmem:[%s4232_s0 + $0x70] sm:$0xff]  }
  0x16   :  { %2354 = vmatprep.subr.msk.bf16.mxu0 %vm215_vm0, %v2353_v2  ;;  %v217_v4 = vsel %vm215_vm0, %v2352_v3, 0  ;;  %2773 = vmatprep.subr.msk.bf16.mxu1 %vm215_vm0, %v2353_v2  ;;  %v2785_v11 = vld [vmem:[%s4232_s0 + $0x18] sm:$0xff]   ;;  %v2786_v13 = vld [vmem:[%s4232_s0 + $0x20] sm:$0xff]   ;;  %v2787_v14 = vld [vmem:[%s4232_s0 + $0x28] sm:$0xff]  }
  0x17   :  { %223 = vmatpush1.bf16.msra.mxu0 %v217_v4  ;;  %2774 = vmatpush1.bf16.msra.mxu1 %v217_v4  ;;  %v2795_v12 = vld [vmem:[%s4232_s0 + $0x78] sm:$0xff]   ;;  %v2788_v15 = vld [vmem:[%s4232_s0 + $0x30] sm:$0xff]   ;;  %v2792_v17 = vld [vmem:[%s4232_s0 + $0x40] sm:$0xff]  }
  0x18   :  { %v2790_v16 = vld [vmem:[%s4232_s0 + $0x38] sm:$0xff]   ;;  %v2794_v18 = vld [vmem:[%s4232_s0 + $0x48] sm:$0xff]   ;;  %v2796_v19 = vld [vmem:[%s4232_s0 + $0x50] sm:$0xff]  }
  0x19   :  { %v2797_v20 = vld [vmem:[%s4232_s0 + $0x58] sm:$0xff]   ;;  %v2798_v21 = vld [vmem:[%s4235_s3] sm:$0xff]   ;;  %v2799_v22 = vld [vmem:[%s4235_s3 + $0x8] sm:$0xff]  }
  0x1a   :  { %2355 = vmatmul.mubr.msk.bf16.vlgmr.msra.gmra.mrb[0].mxu0 %vm166_vm1, %v2782_v5  ;;  %2367 = vmatmul.mubr.msk.bf16.vlgmr.msra.gmra.mrb[0].mxu1 %vm166_vm1, %v2789_v6  ;;  %v2800_v23 = vld [vmem:[%s4235_s3 + $0x10] sm:$0xff]   ;;  %v2801_v24 = vld [vmem:[%s4235_s3 + $0x18] sm:$0xff]   ;;  %v2802_v25 = vld [vmem:[%s4235_s3 + $0x20] sm:$0xff]  }
  0x1b   :  { %264 = vmatprep.mubr.bf16.mxu0 %v4242_v0  ;;  %384 = vmatprep.mubr.bf16.mxu1 %v4242_v0  ;;  %v2803_v26 = vld [vmem:[%s4235_s3 + $0x28] sm:$0xff]   ;;  %v2804_v27 = vld [vmem:[%s4235_s3 + $0x30] sm:$0xff]   ;;  %v2805_v28 = vld [vmem:[%s4235_s3 + $0x38] sm:$0xff]  }
  0x1c   :  { %2629 = vmatprep.subr.bf16.mxu1 %v2798_v21  ;;  %v3498_v29 = vld [vmem:[%s4234_s2] ss:$0 sm:$0xff] }
  0x1d   :  { %2630 = vmatpush3.bf16.msra.mxu1 %v2798_v21 }
  0x1e   :  { %2631 = vmatprep.subr.bf16.mxu1 %v2799_v22 }
  0x21   :  { %2632 = vmatpush3.bf16.msra.mxu1 %v2799_v22 }
  0x22   :  { %2356 = vmatmul.mubr.msk.bf16.gmra.mrb[4].mxu0 %vm166_vm1, %v2783_v7  ;;  %2368 = vmatmul.mubr.msk.bf16.gmra.mrb[4].mxu1 %vm166_vm1, %v2791_v8 }
  0x23   :  { %274 = vmatprep.mubr.bf16.mxu0 %v4242_v0  ;;  %394 = vmatprep.mubr.bf16.mxu1 %v4242_v0 }
  0x24   :  { %2633 = vmatprep.subr.bf16.mxu1 %v2800_v23 }
  0x25   :  { %2634 = vmatpush3.bf16.msra.mxu1 %v2800_v23 }
  0x26   :  { %2635 = vmatprep.subr.bf16.mxu1 %v2801_v24 }
  0x29   :  { %2636 = vmatpush3.bf16.msra.mxu1 %v2801_v24 }
  0x2a   :  { %2357 = vmatmul.mubr.msk.bf16.gmra.mrb[8].mxu0 %vm166_vm1, %v2784_v9  ;;  %2369 = vmatmul.mubr.msk.bf16.gmra.mrb[8].mxu1 %vm166_vm1, %v2793_v10 }
  0x2b   :  { %284 = vmatprep.mubr.bf16.mxu0 %v4242_v0  ;;  %404 = vmatprep.mubr.bf16.mxu1 %v4242_v0 }
  0x2c   :  { %2637 = vmatprep.subr.bf16.mxu1 %v2802_v25 }
  0x2d   :  { %2638 = vmatpush3.bf16.msra.mxu1 %v2802_v25 }
  0x2e   :  { %2639 = vmatprep.subr.bf16.mxu1 %v2803_v26 }
  0x31   :  { %2640 = vmatpush3.bf16.msra.mxu1 %v2803_v26 }
  0x32   :  { %2358 = vmatmul.mubr.msk.bf16.gmra.mrb[12].mxu0 %vm166_vm1, %v2785_v11  ;;  %2370 = vmatmul.mubr.msk.bf16.gmra.mrb[12].mxu1 %vm166_vm1, %v2795_v12 }
  0x33   :  { %294 = vmatprep.mubr.bf16.mxu0 %v4242_v0  ;;  %2641 = vmatprep.subr.bf16.mxu1 %v2804_v27 }
  0x35   :  { %2642 = vmatpush3.bf16.msra.mxu1 %v2804_v27 }
  0x36   :  { %2643 = vmatprep.subr.bf16.mxu1 %v2805_v28 }
  0x39   :  { %2644 = vmatpush3.bf16.msra.mxu1 %v2805_v28 }
  0x3a   :  { %2359 = vmatmul.mubr.msk.bf16.gmra.mrb[16].mxu0 %vm166_vm1, %v2786_v13 }
  0x3b   :  { %304 = vmatprep.mubr.bf16.mxu0 %v4242_v0 }
  0x42   :  { %2360 = vmatmul.mubr.msk.bf16.gmra.mrb[20].mxu0 %vm166_vm1, %v2787_v14 }
  0x43   :  { %314 = vmatprep.mubr.bf16.mxu0 %v4242_v0 }
  0x4a   :  { %2361 = vmatmul.mubr.msk.bf16.gmra.mrb[24].mxu0 %vm166_vm1, %v2788_v15 }
  0x4b   :  { %324 = vmatprep.mubr.bf16.mxu0 %v4242_v0 }
  0x52   :  { %2362 = vmatmul.mubr.msk.bf16.gmra.mrb[28].mxu0 %vm166_vm1, %v2790_v16 }
  0x53   :  { %334 = vmatprep.mubr.bf16.mxu0 %v4242_v0 }
  0x5a   :  { %2363 = vmatmul.mubr.msk.bf16.gmra.mrb[32].mxu0 %vm166_vm1, %v2792_v17 }
  0x5b   :  { %344 = vmatprep.mubr.bf16.mxu0 %v4242_v0 }
  0x62   :  { %2364 = vmatmul.mubr.msk.bf16.gmra.mrb[36].mxu0 %vm166_vm1, %v2794_v18 }
  0x63   :  { %354 = vmatprep.mubr.bf16.mxu0 %v4242_v0 }
  0x6a   :  { %2365 = vmatmul.mubr.msk.bf16.gmra.mrb[40].mxu0 %vm166_vm1, %v2796_v19 }
  0x6b   :  { %364 = vmatprep.mubr.bf16.mxu0 %v4242_v0 }
  0x72   :  { %2366 = vmatmul.mubr.msk.bf16.gmra.mrb[44].mxu0 %vm166_vm1, %v2797_v20 }
  0xed   :  { %v256_v30 = vpop.f32.mrb[0].mxu0  ;;  %v376_v37 = vpop.f32.mrb[0].mxu1 }
  0xee   :  { %v3501_v31 = vadd.f32 %v3498_v29, %v256_v30  ;;  %v3503_v32 = vpop.f32.mrb[1].mxu0  ;;  %v3512_v38 = vadd.f32 %v3498_v29, %v376_v37  ;;  %v3514_v39 = vpop.f32.mrb[1].mxu1 }
  0xef   :  { %v260_v33 = vpop.f32.mrb[2].mxu0  ;;  %v380_v42 = vpop.f32.mrb[2].mxu1 }
  0xf0   :  { %v486_v34 = vand.u32 2147483647, %v3501_v31  ;;  %v3507_v35 = vadd.f32 %v3498_v29, %v260_v33  ;;  %v3509_v36 = vpop.f32.mrb[3].mxu0  ;;  %v510_v43 = vand.u32 2147483647, %v3512_v38  ;;  %v3519_v44 = vadd.f32 %v3498_v29, %v380_v42  ;;  %v3521_v45 = vpop.f32.mrb[3].mxu1 }
  0xf1   :  { %4243 = vst [vmem:[#allocation8_spill] sm:$0xff] %v3521_v45 }
  0xf2   :  { %v518_v40 = vsub.f32 0.0, %v486_v34  ;;  %v487_v41 = vand.u32 2147483647, %v3507_v35  ;;  %v542_v49 = vsub.f32 0.0, %v510_v43  ;;  %v511_v50 = vand.u32 2147483647, %v3519_v44 }
  0xf4   :  { %v550_v46 = vmul.f32 1.442695, %v518_v40  ;;  %v519_v47 = vsub.f32 0.0, %v487_v41  ;;  %v598_v55 = vmul.f32 1.442695, %v542_v49  ;;  %v543_v56 = vsub.f32 0.0, %v511_v50 }
  0xf5   :  { %v266_v48 = vpop.f32.mrb[4].mxu0  ;;  %v386_v60 = vpop.f32.mrb[4].mxu1 }
  0xf6   :  { %2822 = vpow2.f32 %v550_v46  ;;  %v552_v51 = vmul.f32 1.442695, %v519_v47  ;;  %v3525_v52 = vadd.f32 %v3498_v29, %v266_v48  ;;  %v3527_v53 = vpop.f32.mrb[5].mxu0  ;;  %v600_v61 = vmul.f32 1.442695, %v543_v56  ;;  %v3538_v63 = vpop.f32.mrb[5].mxu1 }
  0xf7   :  { %v270_v54 = vpop.f32.mrb[6].mxu0  ;;  %v3536_v62 = vadd.f32 %v3498_v29, %v386_v60  ;;  %v390_v3 = vpop.f32.mrb[6].mxu1 }
  0xf8   :  { %2824 = vpow2.f32 %v552_v51  ;;  %v488_v57 = vand.u32 2147483647, %v3525_v52  ;;  %v3531_v58 = vadd.f32 %v3498_v29, %v270_v54  ;;  %v3533_v59 = vpop.f32.mrb[7].mxu0  ;;  %v3543_v5 = vadd.f32 %v3498_v29, %v390_v3  ;;  %v3545_v6 = vpop.f32.mrb[7].mxu1 }
  0xf9   :  { %2826 = vpow2.f32 %v598_v55  ;;  %v512_v4 = vand.u32 2147483647, %v3536_v62  ;;  %4244 = vst [vmem:[#allocation9_spill] sm:$0xff] %v3545_v6 }
  0xfa   :  { %v520_v1 = vsub.f32 0.0, %v488_v57  ;;  %v489_v2 = vand.u32 2147483647, %v3531_v58  ;;  %2828 = vpow2.f32 %v600_v61  ;;  %v513_v11 = vand.u32 2147483647, %v3543_v5 }
  0xfb   :  { %v544_v10 = vsub.f32 0.0, %v512_v4 }
  0xfc   :  { %v554_v7 = vmul.f32 1.442695, %v520_v1  ;;  %v521_v8 = vsub.f32 0.0, %v489_v2  ;;  %v545_v17 = vsub.f32 0.0, %v513_v11 }
  0xfd   :  { %v276_v9 = vpop.f32.mrb[8].mxu0  ;;  %v602_v16 = vmul.f32 1.442695, %v544_v10  ;;  %v396_v22 = vpop.f32.mrb[8].mxu1 }
  0xfe   :  { %2830 = vpow2.f32 %v554_v7  ;;  %v556_v12 = vmul.f32 1.442695, %v521_v8  ;;  %v3549_v13 = vadd.f32 %v3498_v29, %v276_v9  ;;  %v3551_v14 = vpop.f32.mrb[9].mxu0  ;;  %v604_v24 = vmul.f32 1.442695, %v545_v17  ;;  %v3562_v26 = vpop.f32.mrb[9].mxu1 }
  0xff   :  { %v280_v15 = vpop.f32.mrb[10].mxu0  ;;  %v3560_v25 = vadd.f32 %v3498_v29, %v396_v22  ;;  %4245 = vst [vmem:[#allocation10_spill] sm:$0xff] %v3562_v26  ;;  %v400_v33 = vpop.f32.mrb[10].mxu1 }
 0x100   :  { %v2823_v18 = vpop.eup %2822  ;;  %2832 = vpow2.f32 %v556_v12  ;;  %v490_v19 = vand.u32 2147483647, %v3549_v13  ;;  %v3555_v20 = vadd.f32 %v3498_v29, %v280_v15  ;;  %v3557_v21 = vpop.f32.mrb[11].mxu0  ;;  %v3569_v50 = vadd.f32 %v3498_v29, %v400_v33 }
 0x101   :  { %v614_v23 = vadd.f32 1.0, %v2823_v18  ;;  %2834 = vpow2.f32 %v602_v16  ;;  %v514_v40 = vand.u32 2147483647, %v3560_v25  ;;  %v3566_v41 = vpop.f32.mrb[11].mxu1 }
 0x102   :  { %v2825_v27 = vpop.eup %2824  ;;  %v522_v28 = vsub.f32 0.0, %v490_v19  ;;  %v491_v30 = vand.u32 2147483647, %v3555_v20  ;;  %4246 = vst [vmem:[#allocation11_spill] sm:$0xff] %v3566_v41  ;;  %v515_v61 = vand.u32 2147483647, %v3569_v50 }
 0x103   :  { %v2827_v34 = vpop.eup %2826  ;;  %2836 = vlog2.f32 %v614_v23  ;;  %v615_v37 = vadd.f32 1.0, %v2825_v27  ;;  %v546_v49 = vsub.f32 0.0, %v514_v40 }
 0x104   :  { %v558_v42 = vmul.f32 1.442695, %v522_v28  ;;  %v523_v43 = vsub.f32 0.0, %v491_v30  ;;  %v638_v46 = vadd.f32 1.0, %v2827_v34  ;;  %2838 = vpow2.f32 %v604_v24  ;;  %v2829_v47 = vpop.eup %2828 }
 0x105   :  { %2840 = vlog2.f32 %v615_v37  ;;  %v286_v48 = vpop.f32.mrb[12].mxu0  ;;  %v639_v56 = vadd.f32 1.0, %v2829_v47  ;;  %v606_v60 = vmul.f32 1.442695, %v546_v49  ;;  %v406_v7 = vpop.f32.mrb[12].mxu1  ;;  %v547_v9 = vsub.f32 0.0, %v515_v61 }
 0x106   :  { %2842 = vpow2.f32 %v558_v42  ;;  %v560_v51 = vmul.f32 1.442695, %v523_v43  ;;  %v3572_v54 = vadd.f32 %v3498_v29, %v286_v48  ;;  %v3574_v55 = vpop.f32.mrb[13].mxu0  ;;  %v3583_v10 = vpop.f32.mrb[13].mxu1  ;;  %v454_v28 = vmax.f32 %v3501_v31, 0.0 }
 0x107   :  { %v290_v57 = vpop.f32.mrb[14].mxu0  ;;  %2844 = vlog2.f32 %v638_v46  ;;  %4247 = vst [vmem:[#allocation12_spill] sm:$0xff] %v3583_v10  ;;  %v410_v16 = vpop.f32.mrb[14].mxu1  ;;  %v608_v33 = vmul.f32 1.442695, %v547_v9  ;;  %v3590_v34 = vadd.f32 %v3498_v29, %v406_v7  ;;  %v455_v48 = vmax.f32 %v3507_v35, 0.0 }
 0x108   :  { %v2831_v1 = vpop.eup %2830  ;;  %2846 = vpow2.f32 %v560_v51  ;;  %v492_v2 = vand.u32 2147483647, %v3572_v54  ;;  %v3579_v3 = vadd.f32 %v3498_v29, %v290_v57  ;;  %v3581_v4 = vpop.f32.mrb[15].mxu0  ;;  %v478_v31 = vmax.f32 %v3512_v38, 0.0 }
 0x109   :  { %v616_v8 = vadd.f32 1.0, %v2831_v1  ;;  %2848 = vlog2.f32 %v639_v56  ;;  %v3586_v19 = vpop.f32.mrb[15].mxu1  ;;  %v479_v1 = vmax.f32 %v3519_v44, 0.0  ;;  %v3609_v44 = vadd.f32 %v3498_v29, %v410_v16 }
 0x10a   :  { %v2833_v11 = vpop.eup %2832  ;;  %v524_v12 = vsub.f32 0.0, %v492_v2  ;;  %v493_v15 = vand.u32 2147483647, %v3579_v3  ;;  %2850 = vpow2.f32 %v606_v60  ;;  %4248 = vst [vmem:[#allocation13_spill] sm:$0xff] %v3586_v19  ;;  %v456_v60 = vmax.f32 %v3525_v52, 0.0 }
 0x10b   :  { %v2835_v17 = vpop.eup %2834  ;;  %2852 = vlog2.f32 %v616_v8  ;;  %v617_v18 = vadd.f32 1.0, %v2833_v11 }
 0x10c   :  { %v562_v22 = vmul.f32 1.442695, %v524_v12  ;;  %v525_v23 = vsub.f32 0.0, %v493_v15  ;;  %v640_v24 = vadd.f32 1.0, %v2835_v17  ;;  %v516_v12 = vand.u32 2147483647, %v3590_v34 }
 0x10d   :  { %v2837_v27 = vpop.eup %2836  ;;  %2854 = vlog2.f32 %v617_v18  ;;  %v296_v30 = vpop.f32.mrb[16].mxu0 }
 0x10e   :  { %v2839_v37 = vpop.eup %2838  ;;  %v647_v40 = vmul.f32 0.6931472, %v2837_v27  ;;  %2856 = vpow2.f32 %v562_v22  ;;  %v564_v42 = vmul.f32 1.442695, %v525_v23  ;;  %v3593_v43 = vadd.f32 %v3498_v29, %v296_v30  ;;  %v3595_v46 = vpop.f32.mrb[17].mxu0 }
 0x10f   :  { %v2841_v47 = vpop.eup %2840  ;;  %v300_v49 = vpop.f32.mrb[18].mxu0  ;;  %2858 = vlog2.f32 %v640_v24  ;;  %v641_v51 = vadd.f32 1.0, %v2839_v37 }
 0x110   :  { %v2843_v56 = vpop.eup %2842  ;;  %v649_v57 = vmul.f32 0.6931472, %v2841_v47  ;;  %2860 = vpow2.f32 %v564_v42  ;;  %v3600_v61 = vpop.f32.mrb[19].mxu0  ;;  %v494_v8 = vand.u32 2147483647, %v3593_v43  ;;  %v3605_v35 = vadd.f32 %v3498_v29, %v300_v49 }
 0x111   :  { %v2845_v2 = vpop.eup %2844  ;;  %v618_v7 = vadd.f32 1.0, %v2843_v56  ;;  %2862 = vlog2.f32 %v641_v51  ;;  %v710_v9 = vadd.f32 %v647_v40, %v454_v28  ;;  %v457_v28 = vmax.f32 %v3531_v58, 0.0 }
 0x112   :  { %v2847_v38 = vpop.eup %2846  ;;  %v711_v11 = vadd.f32 %v649_v57, %v455_v48  ;;  %2864 = vpow2.f32 %v608_v33  ;;  %v526_v17 = vsub.f32 0.0, %v494_v8  ;;  %v495_v22 = vand.u32 2147483647, %v3605_v35 }
 0x113   :  { %v2849_v52 = vpop.eup %2848  ;;  %2866 = vlog2.f32 %v618_v7  ;;  %v619_v15 = vadd.f32 1.0, %v2847_v38  ;;  %v695_v24 = vmul.f32 0.6931472, %v2845_v2  ;;  %v480_v49 = vmax.f32 %v3536_v62, 0.0 }
 0x114   :  { %v2851_v18 = vpop.eup %2850  ;;  %v742_v23 = vpack.c.bf16 %v711_v11, %v710_v9  ;;  %v697_v27 = vmul.f32 0.6931472, %v2849_v52  ;;  %v566_v33 = vmul.f32 1.442695, %v526_v17  ;;  %v527_v47 = vsub.f32 0.0, %v495_v22 }
 0x115   :  { %v2853_v30 = vpop.eup %2852  ;;  %2868 = vlog2.f32 %v619_v15  ;;  %v306_v37 = vpop.f32.mrb[20].mxu0  ;;  %v642_v40 = vadd.f32 1.0, %v2851_v18  ;;  %v481_v57 = vmax.f32 %v3543_v5, 0.0  ;;  %v548_v58 = vsub.f32 0.0, %v516_v12 }
 0x116   :  { %v651_v42 = vmul.f32 0.6931472, %v2853_v30  ;;  %v3614_v48 = vadd.f32 %v3498_v29, %v306_v37  ;;  %v3616_v16 = vpop.f32.mrb[21].mxu0  ;;  %2645 = vmatprep.mubr.bf16.mxu1 %v742_v23  ;;  %2870 = vpow2.f32 %v566_v33  ;;  %v517_v2 = vand.u32 2147483647, %v3609_v44 }
 0x117   :  { %v2855_v51 = vpop.eup %2854  ;;  %v310_v56 = vpop.f32.mrb[22].mxu0  ;;  %v568_v38 = vmul.f32 1.442695, %v527_v47  ;;  %v3623_v11 = vadd.f32 %v695_v24, %v478_v31  ;;  %v3625_v52 = vadd.f32 %v697_v27, %v479_v1  ;;  %2872 = vlog2.f32 %v642_v40 }
 0x118   :  { %v2857_v7 = vpop.eup %2856  ;;  %v653_v8 = vmul.f32 0.6931472, %v2855_v51  ;;  %v3621_v9 = vpop.f32.mrb[23].mxu0  ;;  %v496_v62 = vand.u32 2147483647, %v3614_v48  ;;  %v3629_v18 = vadd.f32 %v3498_v29, %v310_v56  ;;  %v712_v12 = vadd.f32 %v651_v42, %v456_v60 }
 0x119   :  { %v2859_v15 = vpop.eup %2858  ;;  %v620_v17 = vadd.f32 1.0, %v2857_v7  ;;  %2874 = vpow2.f32 %v568_v38  ;;  %v549_v24 = vsub.f32 0.0, %v517_v2 }
 0x11a   :  { %v2861_v5 = vpop.eup %2860  ;;  %v713_v22 = vadd.f32 %v653_v8, %v457_v28  ;;  %v699_v23 = vmul.f32 0.6931472, %v2859_v15  ;;  %v528_v31 = vsub.f32 0.0, %v496_v62  ;;  %v497_v37 = vand.u32 2147483647, %v3629_v18 }
 0x11b   :  { %v2863_v30 = vpop.eup %2862  ;;  %2876 = vlog2.f32 %v620_v17  ;;  %v621_v33 = vadd.f32 1.0, %v2861_v5  ;;  %v458_v17 = vmax.f32 %v3549_v13, 0.0  ;;  %v610_v5 = vmul.f32 1.442695, %v548_v58 }
 0x11c   :  { %v2865_v1 = vpop.eup %2864  ;;  %v743_v27 = vpack.c.bf16 %v713_v22, %v712_v12  ;;  %v3632_v47 = vadd.f32 %v699_v23, %v480_v49  ;;  %v701_v51 = vmul.f32 0.6931472, %v2863_v30  ;;  %v570_v40 = vmul.f32 1.442695, %v528_v31 }
 0x11d   :  { %v2867_v56 = vpop.eup %2866  ;;  %2878 = vlog2.f32 %v621_v33  ;;  %v316_v7 = vpop.f32.mrb[24].mxu0  ;;  %v643_v60 = vadd.f32 1.0, %v2865_v1  ;;  %v529_v8 = vsub.f32 0.0, %v497_v37  ;;  %v612_v12 = vmul.f32 1.442695, %v549_v24 }
 0x11e   :  { %v655_v42 = vmul.f32 0.6931472, %v2867_v56  ;;  %v3637_v38 = vadd.f32 %v3498_v29, %v316_v7  ;;  %v3639_v2 = vpop.f32.mrb[25].mxu0  ;;  %2646 = vmatmul.mubr.bf16.vlgmr.msra.gmra.mrb[16].mxu1 %v743_v27  ;;  %v3641_v15 = vadd.f32 %v701_v51, %v481_v57  ;;  %2880 = vpow2.f32 %v570_v40 }
 0x11f   :  { %v2869_v49 = vpop.eup %2868  ;;  %v320_v62 = vpop.f32.mrb[26].mxu0  ;;  %v459_v22 = vmax.f32 %v3555_v20, 0.0  ;;  %v572_v30 = vmul.f32 1.442695, %v529_v8  ;;  %2882 = vlog2.f32 %v643_v60 }
 0x120   :  { %v657_v23 = vmul.f32 0.6931472, %v2869_v49  ;;  %v3645_v33 = vpop.f32.mrb[27].mxu0  ;;  %v2871_v31 = vpop.eup %2870  ;;  %v498_v1 = vand.u32 2147483647, %v3637_v38  ;;  %v3649_v27 = vadd.f32 %v3498_v29, %v320_v62  ;;  %v714_v57 = vadd.f32 %v655_v42, %v458_v17 }
 0x121   :  { %v622_v58 = vadd.f32 1.0, %v2871_v31  ;;  %2884 = vpow2.f32 %v572_v30  ;;  %v2873_v24 = vpop.eup %2872  ;;  %v460_v30 = vmax.f32 %v3572_v54, 0.0  ;;  %v461_v31 = vmax.f32 %v3579_v3, 0.0 }
 0x122   :  { %v715_v37 = vadd.f32 %v657_v23, %v459_v22  ;;  %v530_v20 = vsub.f32 0.0, %v498_v1  ;;  %v499_v51 = vand.u32 2147483647, %v3649_v27  ;;  %2886 = vpow2.f32 %v610_v5 }
 0x123   :  { %v2875_v56 = vpop.eup %2874  ;;  %2888 = vlog2.f32 %v622_v58  ;;  %v482_v23 = vmax.f32 %v3560_v25, 0.0  ;;  %v483_v25 = vmax.f32 %v3569_v50, 0.0 }
 0x124   :  { %v744_v40 = vpack.c.bf16 %v715_v37, %v714_v57  ;;  %v623_v8 = vadd.f32 1.0, %v2875_v56  ;;  %v574_v49 = vmul.f32 1.442695, %v530_v20  ;;  %v531_v62 = vsub.f32 0.0, %v499_v51 }
 0x125   :  { %v2877_v7 = vpop.eup %2876  ;;  %v326_v60 = vpop.f32.mrb[28].mxu0  ;;  %2890 = vpow2.f32 %v612_v12  ;;  %v703_v20 = vmul.f32 0.6931472, %v2873_v24 }
 0x126   :  { %v659_v0 = vmul.f32 0.6931472, %v2877_v7  ;;  %v3655_v13 = vadd.f32 %v3498_v29, %v326_v60  ;;  %v3657_v42 = vpop.f32.mrb[29].mxu0  ;;  %2649 = vmatprep.mubr.bf16.mxu1 %v744_v40  ;;  %2892 = vlog2.f32 %v623_v8  ;;  %v576_v22 = vmul.f32 1.442695, %v531_v62 }
 0x127   :  { %v2879_v17 = vpop.eup %2878  ;;  %v330_v5 = vpop.f32.mrb[30].mxu0  ;;  %2894 = vpow2.f32 %v574_v49  ;;  %v3670_v41 = vadd.f32 %v703_v20, %v482_v23 }
 0x128   :  { %v661_v1 = vmul.f32 0.6931472, %v2879_v17  ;;  %v3662_v57 = vpop.f32.mrb[31].mxu0  ;;  %v2881_v37 = vpop.eup %2880  ;;  %2896 = vpow2.f32 %v576_v22  ;;  %v500_v58 = vand.u32 2147483647, %v3655_v13  ;;  %v3666_v12 = vadd.f32 %v3498_v29, %v330_v5 }
 0x129   :  { %v716_v51 = vadd.f32 %v659_v0, %v460_v30  ;;  %v624_v40 = vadd.f32 1.0, %v2881_v37  ;;  %v2883_v54 = vpop.eup %2882 }
 0x12a   :  { %v717_v56 = vadd.f32 %v661_v1, %v461_v31  ;;  %v532_v7 = vsub.f32 0.0, %v500_v58  ;;  %v501_v3 = vand.u32 2147483647, %v3666_v12  ;;  %v705_v62 = vmul.f32 0.6931472, %v2883_v54 }
 0x12b   :  { %v2885_v8 = vpop.eup %2884  ;;  %2898 = vlog2.f32 %v624_v40  ;;  %v462_v54 = vmax.f32 %v3593_v43, 0.0 }
 0x12c   :  { %v745_v49 = vpack.c.bf16 %v717_v56, %v716_v51  ;;  %v2887_v60 = vpop.eup %2886  ;;  %v625_v17 = vadd.f32 1.0, %v2885_v8  ;;  %v578_v22 = vmul.f32 1.442695, %v532_v7  ;;  %v533_v28 = vsub.f32 0.0, %v501_v3 }
 0x12d   :  { %v336_v5 = vpop.f32.mrb[32].mxu0  ;;  %v2889_v0 = vpop.eup %2888  ;;  %v3677_v30 = vadd.f32 %v705_v62, %v483_v25  ;;  %v644_v58 = vadd.f32 1.0, %v2887_v60 }
 0x12e   :  { %v3673_v24 = vadd.f32 %v3498_v29, %v336_v5  ;;  %v3675_v50 = vpop.f32.mrb[33].mxu0  ;;  %2650 = vmatmul.mubr.bf16.gmra.mrb[20].mxu1 %v745_v49  ;;  %v663_v31 = vmul.f32 0.6931472, %v2889_v0  ;;  %2900 = vlog2.f32 %v625_v17  ;;  %v580_v1 = vmul.f32 1.442695, %v533_v28 }
 0x12f   :  { %v340_v37 = vpop.f32.mrb[34].mxu0  ;;  %v2891_v51 = vpop.eup %2890  ;;  %2902 = vpow2.f32 %v578_v22  ;;  %v463_v28 = vmax.f32 %v3605_v35, 0.0 }
 0x130   :  { %v502_v56 = vand.u32 2147483647, %v3673_v24  ;;  %v3681_v23 = vadd.f32 %v3498_v29, %v340_v37  ;;  %v3683_v20 = vpop.f32.mrb[35].mxu0  ;;  %v2893_v40 = vpop.eup %2892  ;;  %2904 = vpow2.f32 %v580_v1  ;;  %v718_v60 = vadd.f32 %v663_v31, %v462_v54 }
 0x131   :  { %v2895_v7 = vpop.eup %2894  ;;  %v665_v3 = vmul.f32 0.6931472, %v2893_v40  ;;  %2906 = vlog2.f32 %v644_v58  ;;  %v645_v1 = vadd.f32 1.0, %v2891_v51 }
 0x132   :  { %v534_v8 = vsub.f32 0.0, %v502_v56  ;;  %v503_v49 = vand.u32 2147483647, %v3681_v23  ;;  %v2897_v62 = vpop.eup %2896  ;;  %v626_v17 = vadd.f32 1.0, %v2895_v7 }
 0x133   :  { %v719_v22 = vadd.f32 %v665_v3, %v463_v28  ;;  %v627_v5 = vadd.f32 1.0, %v2897_v62 }
 0x134   :  { %v582_v0 = vmul.f32 1.442695, %v534_v8  ;;  %v535_v37 = vsub.f32 0.0, %v503_v49  ;;  %2908 = vlog2.f32 %v626_v17  ;;  %v465_v8 = vmax.f32 %v3629_v18, 0.0 }
 0x135   :  { %v346_v43 = vpop.f32.mrb[36].mxu0  ;;  %v2899_v19 = vpop.eup %2898  ;;  %2910 = vlog2.f32 %v627_v5  ;;  %v746_v40 = vpack.c.bf16 %v719_v22, %v718_v60 }
 0x136   :  { %v584_v25 = vmul.f32 1.442695, %v535_v37  ;;  %v3691_v35 = vadd.f32 %v3498_v29, %v346_v43  ;;  %v3693_v56 = vpop.f32.mrb[37].mxu0  ;;  %2912 = vpow2.f32 %v582_v0  ;;  %v667_v28 = vmul.f32 0.6931472, %v2899_v19 }
 0x137   :  { %v350_v31 = vpop.f32.mrb[38].mxu0  ;;  %2653 = vmatprep.mubr.bf16.mxu1 %v746_v40 }
 0x138   :  { %2914 = vpow2.f32 %v584_v25  ;;  %v504_v58 = vand.u32 2147483647, %v3691_v35  ;;  %v3697_v54 = vadd.f32 %v3498_v29, %v350_v31  ;;  %v3699_v7 = vpop.f32.mrb[39].mxu0  ;;  %v2901_v51 = vpop.eup %2900  ;;  %v464_v25 = vmax.f32 %v3614_v48, 0.0 }
 0x139   :  { %2916 = vlog2.f32 %v645_v1  ;;  %v2903_v3 = vpop.eup %2902  ;;  %v669_v49 = vmul.f32 0.6931472, %v2901_v51  ;;  %v484_v48 = vmax.f32 %v3590_v34, 0.0 }
 0x13a   :  { %v536_v62 = vsub.f32 0.0, %v504_v58  ;;  %v505_v60 = vand.u32 2147483647, %v3697_v54  ;;  %v2905_v17 = vpop.eup %2904  ;;  %v628_v22 = vadd.f32 1.0, %v2903_v3  ;;  %v720_v31 = vadd.f32 %v667_v28, %v464_v25 }
 0x13b   :  { %v721_v5 = vadd.f32 %v669_v49, %v465_v8  ;;  %v629_v0 = vadd.f32 1.0, %v2905_v17  ;;  %v2907_v40 = vpop.eup %2906  ;;  %v467_v28 = vmax.f32 %v3649_v27, 0.0 }
 0x13c   :  { %v586_v37 = vmul.f32 1.442695, %v536_v62  ;;  %v537_v43 = vsub.f32 0.0, %v505_v60  ;;  %2918 = vlog2.f32 %v628_v22  ;;  %v466_v62 = vmax.f32 %v3637_v38, 0.0 }
 0x13d   :  { %v356_v19 = vpop.f32.mrb[40].mxu0  ;;  %2920 = vlog2.f32 %v629_v0  ;;  %v747_v3 = vpack.c.bf16 %v721_v5, %v720_v31  ;;  %v707_v0 = vmul.f32 0.6931472, %v2907_v40  ;;  %v485_v31 = vmax.f32 %v3609_v44, 0.0 }
 0x13e   :  { %v588_v1 = vmul.f32 1.442695, %v537_v43  ;;  %v3705_v18 = vadd.f32 %v3498_v29, %v356_v19  ;;  %v3707_v58 = vpop.f32.mrb[41].mxu0  ;;  %v2909_v51 = vpop.eup %2908  ;;  %2922 = vpow2.f32 %v586_v37 }
 0x13f   :  { %v360_v8 = vpop.f32.mrb[42].mxu0  ;;  %v2911_v49 = vpop.eup %2910  ;;  %v671_v60 = vmul.f32 0.6931472, %v2909_v51  ;;  %2654 = vmatmul.mubr.bf16.gmra.mrb[24].mxu1 %v747_v3  ;;  %v3720_v40 = vadd.f32 %v707_v0, %v484_v48 }
 0x140   :  { %2924 = vpow2.f32 %v588_v1  ;;  %v3712_v17 = vpop.f32.mrb[43].mxu0  ;;  %v2913_v25 = vpop.eup %2912  ;;  %v673_v22 = vmul.f32 0.6931472, %v2911_v49  ;;  %v506_v43 = vand.u32 2147483647, %v3705_v18  ;;  %v3716_v37 = vadd.f32 %v3498_v29, %v360_v8 }
 0x141   :  { %v630_v5 = vadd.f32 1.0, %v2913_v25  ;;  %v722_v19 = vadd.f32 %v671_v60, %v466_v62 }
 0x142   :  { %v2915_v34 = vpop.eup %2914  ;;  %v723_v51 = vadd.f32 %v673_v22, %v467_v28  ;;  %v538_v1 = vsub.f32 0.0, %v506_v43  ;;  %v507_v49 = vand.u32 2147483647, %v3716_v37  ;;  %v468_v43 = vmax.f32 %v3655_v13, 0.0 }
 0x143   :  { %v2917_v38 = vpop.eup %2916  ;;  %v631_v27 = vadd.f32 1.0, %v2915_v34  ;;  %2926 = vlog2.f32 %v630_v5 }
 0x144   :  { %v709_v26 = vmul.f32 0.6931472, %v2917_v38  ;;  %v590_v3 = vmul.f32 1.442695, %v538_v1  ;;  %v748_v8 = vpack.c.bf16 %v723_v51, %v722_v19  ;;  %v539_v25 = vsub.f32 0.0, %v507_v49 }
 0x145   :  { %2928 = vlog2.f32 %v631_v27  ;;  %v366_v10 = vpop.f32.mrb[44].mxu0 }
 0x146   :  { %v3722_v45 = vadd.f32 %v709_v26, %v485_v31  ;;  %v3725_v44 = vadd.f32 %v3498_v29, %v366_v10  ;;  %v3727_v62 = vpop.f32.mrb[45].mxu0  ;;  %v2919_v60 = vpop.eup %2918  ;;  %2930 = vpow2.f32 %v590_v3  ;;  %2657 = vmatprep.mubr.bf16.mxu1 %v748_v8  ;;  %v592_v0 = vmul.f32 1.442695, %v539_v25 }
 0x147   :  { %v370_v28 = vpop.f32.mrb[46].mxu0  ;;  %v2921_v22 = vpop.eup %2920  ;;  %v675_v48 = vmul.f32 0.6931472, %v2919_v60  ;;  %v469_v10 = vmax.f32 %v3666_v12, 0.0 }
 0x148   :  { %v3731_v34 = vadd.f32 %v3498_v29, %v370_v28  ;;  %v3733_v26 = vpop.f32.mrb[47].mxu0  ;;  %v2923_v5 = vpop.eup %2922  ;;  %v677_v31 = vmul.f32 0.6931472, %v2921_v22  ;;  %v508_v38 = vand.u32 2147483647, %v3725_v44  ;;  %v757_v19 = vpack.c.bf16 %v3722_v45, %v3720_v40  ;;  %v2810_v45 = vld [vmem:[%s4237_s5 + $0x20] sm:$0xff]  }
 0x149   :  { %v724_v27 = vadd.f32 %v675_v48, %v468_v43  ;;  %v632_v1 = vadd.f32 1.0, %v2923_v5  ;;  %2932 = vpow2.f32 %v592_v0  ;;  %v470_v43 = vmax.f32 %v3673_v24, 0.0  ;;  %v3787_v40 = vld [vmem:[%s4236_s4] ss:$0 sm:$0xff] }
 0x14a   :  { %v2925_v51 = vpop.eup %2924  ;;  %v725_v13 = vadd.f32 %v677_v31, %v469_v10  ;;  %v540_v3 = vsub.f32 0.0, %v508_v38  ;;  %v509_v29 = vand.u32 2147483647, %v3731_v34  ;;  %v471_v48 = vmax.f32 %v3681_v23, 0.0 }
 0x14b   :  { %v633_v49 = vadd.f32 1.0, %v2925_v51  ;;  %2934 = vlog2.f32 %v632_v1  ;;  %v473_v24 = vmax.f32 %v3697_v54, 0.0 }
 0x14c   :  { %v594_v8 = vmul.f32 1.442695, %v540_v3  ;;  %v541_v25 = vsub.f32 0.0, %v509_v29  ;;  %v749_v12 = vpack.c.bf16 %v725_v13, %v724_v27  ;;  %v472_v29 = vmax.f32 %v3691_v35, 0.0 }
 0x14d   :  { %2936 = vlog2.f32 %v633_v49  ;;  %v2927_v60 = vpop.eup %2926  ;;  %v475_v35 = vmax.f32 %v3716_v37, 0.0  ;;  %v4250_v37 = vpack.c.bf16 %v3641_v15, %v3632_v47  ;;  %v2811_v47 = vld [vmem:[%s4237_s5 + $0x28] sm:$0xff]   ;;  %v2812_v15 = vld [vmem:[%s4237_s5 + $0x30] sm:$0xff]  }
 0x14e   :  { %v679_v22 = vmul.f32 0.6931472, %v2927_v60  ;;  %2938 = vpow2.f32 %v594_v8  ;;  %v596_v6 = vmul.f32 1.442695, %v541_v25  ;;  %2658 = vmatmul.mubr.bf16.gmra.mrb[28].mxu1 %v749_v12 }
 0x14f   :  { %v2929_v28 = vpop.eup %2928 }
 0x150   :  { %v681_v0 = vmul.f32 0.6931472, %v2929_v28  ;;  %v2931_v5 = vpop.eup %2930  ;;  %2940 = vpow2.f32 %v596_v6  ;;  %v726_v10 = vadd.f32 %v679_v22, %v470_v43 }
 0x151   :  { %v634_v38 = vadd.f32 1.0, %v2931_v5  ;;  %v474_v5 = vmax.f32 %v3705_v18, 0.0  ;;  %v4249_v18 = vpack.c.bf16 %v3625_v52, %v3623_v11  ;;  %v2807_v11 = vld [vmem:[%s4237_s5 + $0x8] sm:$0xff]   ;;  %v2809_v52 = vld [vmem:[%s4237_s5 + $0x18] sm:$0xff]  }
 0x152   :  { %v727_v31 = vadd.f32 %v681_v0, %v471_v48 }
 0x153   :  { %v2933_v51 = vpop.eup %2932  ;;  %2942 = vlog2.f32 %v634_v38 }
 0x154   :  { %v750_v1 = vpack.c.bf16 %v727_v31, %v726_v10  ;;  %v635_v27 = vadd.f32 1.0, %v2933_v51 }
 0x155   :  { %v2935_v13 = vpop.eup %2934 }
 0x156   :  { %2661 = vmatprep.mubr.bf16.mxu1 %v750_v1  ;;  %v683_v3 = vmul.f32 0.6931472, %v2935_v13  ;;  %2944 = vlog2.f32 %v635_v27  ;;  %v476_v13 = vmax.f32 %v3725_v44, 0.0  ;;  %v2806_v44 = vld [vmem:[%s4237_s5] sm:$0xff]  }
 0x157   :  { %v2937_v49 = vpop.eup %2936  ;;  %2677 = vmatprep.subr.bf16.mxu1 %v2806_v44 }
 0x158   :  { %v685_v23 = vmul.f32 0.6931472, %v2937_v49  ;;  %v2939_v8 = vpop.eup %2938  ;;  %v728_v25 = vadd.f32 %v683_v3, %v472_v29  ;;  %v477_v49 = vmax.f32 %v3731_v34, 0.0  ;;  %2678 = vmatpush3.bf16.msra.mxu1 %v2806_v44  ;;  %v2814_v44 = vld [vmem:[#allocation2] sm:$0xff]  }
 0x159   :  { %v636_v12 = vadd.f32 1.0, %v2939_v8  ;;  %v4251_v8 = vpack.c.bf16 %v3677_v30, %v3670_v41  ;;  %2679 = vmatprep.subr.bf16.mxu1 %v2807_v11  ;;  %v2808_v41 = vld [vmem:[%s4237_s5 + $0x10] sm:$0xff]   ;;  %v2813_v30 = vld [vmem:[%s4237_s5 + $0x38] sm:$0xff]   ;;  %2725 = vmatprep.subr.bf16.mxu0 %v2814_v44 }
 0x15a   :  { %v729_v6 = vadd.f32 %v685_v23, %v473_v24  ;;  %v2941_v60 = vpop.eup %2940  ;;  %2726 = vmatpush3.bf16.msra.mxu0 %v2814_v44 }
 0x15b   :  { %2946 = vlog2.f32 %v636_v12  ;;  %v637_v28 = vadd.f32 1.0, %v2941_v60 }
 0x15c   :  { %v751_v22 = vpack.c.bf16 %v729_v6, %v728_v25  ;;  %2680 = vmatpush3.bf16.msra.mxu1 %v2807_v11  ;;  %v2815_v11 = vld [vmem:[#allocation2 + $0x8] sm:$0xff]  }
 0x15d   :  { %v2943_v43 = vpop.eup %2942  ;;  %2948 = vlog2.f32 %v637_v28  ;;  %2681 = vmatprep.subr.bf16.mxu1 %v2808_v41  ;;  %2727 = vmatprep.subr.bf16.mxu0 %v2815_v11 }
 0x15e   :  { %2662 = vmatmul.mubr.bf16.gmra.mrb[32].mxu1 %v751_v22  ;;  %v687_v48 = vmul.f32 0.6931472, %v2943_v43  ;;  %2728 = vmatpush3.bf16.msra.mxu0 %v2815_v11 }
 0x160   :  { %v2945_v0 = vpop.eup %2944  ;;  %v730_v54 = vadd.f32 %v687_v48, %v474_v5  ;;  %2682 = vmatpush3.bf16.msra.mxu1 %v2808_v41 }
 0x161   :  { %v689_v10 = vmul.f32 0.6931472, %v2945_v0  ;;  %2683 = vmatprep.subr.bf16.mxu1 %v2809_v52 }
 0x163   :  { %v731_v31 = vadd.f32 %v689_v10, %v475_v35 }
 0x164   :  { %2684 = vmatpush3.bf16.msra.mxu1 %v2809_v52 }
 0x165   :  { %v2947_v38 = vpop.eup %2946  ;;  %v752_v51 = vpack.c.bf16 %v731_v31, %v730_v54  ;;  %2685 = vmatprep.subr.bf16.mxu1 %v2810_v45 }
 0x166   :  { %v691_v1 = vmul.f32 0.6931472, %v2947_v38 }
 0x167   :  { %v2949_v27 = vpop.eup %2948  ;;  %2665 = vmatprep.mubr.bf16.mxu1 %v752_v51 }
 0x168   :  { %v693_v3 = vmul.f32 0.6931472, %v2949_v27  ;;  %v732_v29 = vadd.f32 %v691_v1, %v476_v13  ;;  %2686 = vmatpush3.bf16.msra.mxu1 %v2810_v45 }
 0x169   :  { %2687 = vmatprep.subr.bf16.mxu1 %v2811_v47 }
 0x16a   :  { %v733_v24 = vadd.f32 %v693_v3, %v477_v49 }
 0x16c   :  { %v753_v23 = vpack.c.bf16 %v733_v24, %v732_v29  ;;  %2688 = vmatpush3.bf16.msra.mxu1 %v2811_v47 }
 0x16d   :  { %2689 = vmatprep.subr.bf16.mxu1 %v2812_v15 }
 0x16e   :  { %2666 = vmatmul.mubr.bf16.gmra.mrb[36].mxu1 %v753_v23 }
 0x16f   :  { %2669 = vmatprep.mubr.bf16.mxu1 %v4249_v18 }
 0x170   :  { %2690 = vmatpush3.bf16.msra.mxu1 %v2812_v15 }
 0x171   :  { %2691 = vmatprep.subr.bf16.mxu1 %v2813_v30 }
 0x174   :  { %2692 = vmatpush3.bf16.msra.mxu1 %v2813_v30 }
 0x176   :  { %2670 = vmatmul.mubr.bf16.gmra.mrb[40].mxu1 %v4250_v37 }
 0x177   :  { %2673 = vmatprep.mubr.bf16.mxu1 %v4251_v8 }
 0x17e   :  { %2674 = vmatmul.mubr.bf16.gmra.mrb[44].mxu1 %v757_v19 }
 0x1f1   :  { %v2647_v34 = vpop.f32.mrb[16].mxu1 }
 0x1f2   :  { %v3790_v19 = vadd.f32 %v2647_v34, %v3787_v40  ;;  %v863_v25 = vpop.f32.mrb[17].mxu1 }
 0x1f3   :  { %v3793_v6 = vadd.f32 %v3787_v40, %v863_v25  ;;  %v2648_v12 = vpop.f32.mrb[18].mxu1 }
 0x1f4   :  { %v1024_v60 = vand.u32 2147483647, %v3790_v19  ;;  %v3797_v28 = vadd.f32 %v2648_v12, %v3787_v40  ;;  %v866_v22 = vpop.f32.mrb[19].mxu1 }
 0x1f5   :  { %v1022_v43 = vand.u32 2147483647, %v3793_v6  ;;  %v3801_v48 = vadd.f32 %v3787_v40, %v866_v22 }
 0x1f6   :  { %v1056_v0 = vsub.f32 0.0, %v1024_v60  ;;  %v1025_v5 = vand.u32 2147483647, %v3797_v28 }
 0x1f7   :  { %v1054_v35 = vsub.f32 0.0, %v1022_v43  ;;  %v1023_v10 = vand.u32 2147483647, %v3801_v48  ;;  %v991_v11 = vmax.f32 %v3801_v48, 0.0 }
 0x1f8   :  { %v1090_v54 = vmul.f32 1.442695, %v1056_v0  ;;  %v1057_v31 = vsub.f32 0.0, %v1025_v5 }
 0x1f9   :  { %v1086_v38 = vmul.f32 1.442695, %v1054_v35  ;;  %v1055_v51 = vsub.f32 0.0, %v1023_v10 }
 0x1fa   :  { %2950 = vpow2.f32 %v1090_v54  ;;  %v1092_v1 = vmul.f32 1.442695, %v1057_v31 }
 0x1fb   :  { %2952 = vpow2.f32 %v1086_v38  ;;  %v1088_v27 = vmul.f32 1.442695, %v1055_v51 }
 0x1fc   :  { %2954 = vpow2.f32 %v1092_v1 }
 0x1fd   :  { %2956 = vpow2.f32 %v1088_v27 }
 0x201   :  { %v2651_v13 = vpop.f32.mrb[20].mxu1 }
 0x202   :  { %v3806_v49 = vadd.f32 %v2651_v13, %v3787_v40  ;;  %v879_v3 = vpop.f32.mrb[21].mxu1 }
 0x203   :  { %v3809_v29 = vadd.f32 %v3787_v40, %v879_v3  ;;  %v2652_v24 = vpop.f32.mrb[22].mxu1  ;;  %v992_v3 = vmax.f32 %v3790_v19, 0.0 }
 0x204   :  { %v2951_v23 = vpop.eup %2950  ;;  %v1028_v18 = vand.u32 2147483647, %v3806_v49  ;;  %v3813_v37 = vadd.f32 %v2652_v24, %v3787_v40  ;;  %v882_v8 = vpop.f32.mrb[23].mxu1 }
 0x205   :  { %v2953_v41 = vpop.eup %2952  ;;  %v1152_v52 = vadd.f32 1.0, %v2951_v23  ;;  %v1026_v45 = vand.u32 2147483647, %v3809_v29  ;;  %v3817_v47 = vadd.f32 %v3787_v40, %v882_v8 }
 0x206   :  { %v2955_v15 = vpop.eup %2954  ;;  %v1150_v30 = vadd.f32 1.0, %v2953_v41  ;;  %v1060_v34 = vsub.f32 0.0, %v1028_v18  ;;  %v1029_v25 = vand.u32 2147483647, %v3813_v37  ;;  %v993_v18 = vmax.f32 %v3797_v28, 0.0 }
 0x207   :  { %v2957_v12 = vpop.eup %2956  ;;  %2958 = vlog2.f32 %v1152_v52  ;;  %v1153_v60 = vadd.f32 1.0, %v2955_v15  ;;  %v1058_v22 = vsub.f32 0.0, %v1026_v45  ;;  %v1027_v10 = vand.u32 2147483647, %v3817_v47 }
 0x208   :  { %2960 = vlog2.f32 %v1150_v30  ;;  %v1151_v43 = vadd.f32 1.0, %v2957_v12  ;;  %v1098_v0 = vmul.f32 1.442695, %v1060_v34  ;;  %v1061_v5 = vsub.f32 0.0, %v1029_v25 }
 0x209   :  { %2962 = vlog2.f32 %v1153_v60  ;;  %v1094_v35 = vmul.f32 1.442695, %v1058_v22  ;;  %v1059_v31 = vsub.f32 0.0, %v1027_v10  ;;  %v990_v52 = vmax.f32 %v3793_v6, 0.0 }
 0x20a   :  { %2964 = vlog2.f32 %v1151_v43  ;;  %v1100_v54 = vmul.f32 1.442695, %v1061_v5 }
 0x20b   :  { %2966 = vpow2.f32 %v1098_v0  ;;  %v1096_v38 = vmul.f32 1.442695, %v1059_v31 }
 0x20c   :  { %2968 = vpow2.f32 %v1094_v35 }
 0x20d   :  { %2970 = vpow2.f32 %v1100_v54 }
 0x20e   :  { %2972 = vpow2.f32 %v1096_v38 }
 0x211   :  { %v2959_v51 = vpop.eup %2958 }
 0x212   :  { %v2961_v1 = vpop.eup %2960  ;;  %v1187_v27 = vmul.f32 0.6931472, %v2959_v51  ;;  %v2655_v44 = vpop.f32.mrb[24].mxu1 }
 0x213   :  { %v2963_v13 = vpop.eup %2962  ;;  %v1183_v23 = vmul.f32 0.6931472, %v2961_v1  ;;  %v3826_v15 = vadd.f32 %v2655_v44, %v3787_v40  ;;  %v895_v30 = vpop.f32.mrb[25].mxu1 }
 0x214   :  { %v2965_v24 = vpop.eup %2964  ;;  %v1189_v8 = vmul.f32 0.6931472, %v2963_v13  ;;  %v1248_v25 = vadd.f32 %v1187_v27, %v992_v3  ;;  %v3829_v60 = vadd.f32 %v3787_v40, %v895_v30  ;;  %v2656_v28 = vpop.f32.mrb[26].mxu1 }
 0x215   :  { %v2967_v41 = vpop.eup %2966  ;;  %v1185_v45 = vmul.f32 0.6931472, %v2965_v24  ;;  %v1032_v6 = vand.u32 2147483647, %v3826_v15  ;;  %v898_v5 = vpop.f32.mrb[27].mxu1  ;;  %v1246_v48 = vadd.f32 %v1183_v23, %v990_v52  ;;  %v3834_v51 = vadd.f32 %v2656_v28, %v3787_v40 }
 0x216   :  { %v2969_v34 = vpop.eup %2968  ;;  %v1249_v12 = vadd.f32 %v1189_v8, %v993_v18  ;;  %v1156_v19 = vadd.f32 1.0, %v2967_v41  ;;  %v1030_v38 = vand.u32 2147483647, %v3829_v60  ;;  %v3837_v27 = vadd.f32 %v3787_v40, %v898_v5 }
 0x217   :  { %v2971_v22 = vpop.eup %2970  ;;  %v1247_v43 = vadd.f32 %v1185_v45, %v991_v11  ;;  %v1154_v0 = vadd.f32 1.0, %v2969_v34  ;;  %v1064_v31 = vsub.f32 0.0, %v1032_v6  ;;  %v1033_v23 = vand.u32 2147483647, %v3834_v51 }
 0x218   :  { %v1279_v35 = vpack.c.bf16 %v1249_v12, %v1248_v25  ;;  %2974 = vlog2.f32 %v1156_v19  ;;  %v1157_v10 = vadd.f32 1.0, %v2971_v22  ;;  %v2973_v54 = vpop.eup %2972  ;;  %v1062_v24 = vsub.f32 0.0, %v1030_v38 }
 0x219   :  { %2976 = vlog2.f32 %v1154_v0  ;;  %v1155_v1 = vadd.f32 1.0, %v2973_v54  ;;  %v1278_v13 = vpack.c.bf16 %v1247_v43, %v1246_v48  ;;  %v1106_v3 = vmul.f32 1.442695, %v1064_v31 }
 0x21a   :  { %2978 = vlog2.f32 %v1157_v10  ;;  %v1031_v18 = vand.u32 2147483647, %v3837_v27  ;;  %v1102_v8 = vmul.f32 1.442695, %v1062_v24  ;;  %v1065_v44 = vsub.f32 0.0, %v1033_v23 }
 0x21b   :  { %2980 = vlog2.f32 %v1155_v1  ;;  %2693 = vmatprep.mubr.bf16.mxu1 %v1278_v13  ;;  %v996_v28 = vmax.f32 %v3806_v49, 0.0  ;;  %v997_v5 = vmax.f32 %v3813_v37, 0.0  ;;  %v994_v31 = vmax.f32 %v3809_v29, 0.0 }
 0x21c   :  { %2982 = vpow2.f32 %v1106_v3  ;;  %2694 = vmatmul.mubr.bf16.vlgmr.msra.gmra.mrb[48].mxu1 %v1279_v35  ;;  %v1063_v41 = vsub.f32 0.0, %v1031_v18  ;;  %v1108_v52 = vmul.f32 1.442695, %v1065_v44  ;;  %v995_v38 = vmax.f32 %v3817_v47, 0.0 }
 0x21d   :  { %2984 = vpow2.f32 %v1102_v8 }
 0x21e   :  { %v1104_v11 = vmul.f32 1.442695, %v1063_v41  ;;  %2986 = vpow2.f32 %v1108_v52 }
 0x220   :  { %2988 = vpow2.f32 %v1104_v11 }
 0x221   :  { %v2659_v30 = vpop.f32.mrb[28].mxu1 }
 0x222   :  { %v2975_v45 = vpop.eup %2974  ;;  %v3842_v25 = vadd.f32 %v2659_v30, %v3787_v40  ;;  %v911_v12 = vpop.f32.mrb[29].mxu1 }
 0x223   :  { %v2977_v34 = vpop.eup %2976  ;;  %v1195_v22 = vmul.f32 0.6931472, %v2975_v45  ;;  %v3846_v0 = vadd.f32 %v3787_v40, %v911_v12  ;;  %v2660_v6 = vpop.f32.mrb[30].mxu1 }
 0x224   :  { %v2979_v19 = vpop.eup %2978  ;;  %v1191_v43 = vmul.f32 0.6931472, %v2977_v34  ;;  %v1036_v35 = vand.u32 2147483647, %v3842_v25  ;;  %v914_v10 = vpop.f32.mrb[31].mxu1  ;;  %v3854_v49 = vadd.f32 %v2660_v6, %v3787_v40 }
 0x225   :  { %v1197_v48 = vmul.f32 0.6931472, %v2979_v19  ;;  %v2981_v54 = vpop.eup %2980  ;;  %v1034_v1 = vand.u32 2147483647, %v3846_v0  ;;  %v3857_v37 = vadd.f32 %v3787_v40, %v914_v10  ;;  %v1252_v18 = vadd.f32 %v1195_v22, %v996_v28 }
 0x226   :  { %v2983_v13 = vpop.eup %2982  ;;  %v1193_v24 = vmul.f32 0.6931472, %v2981_v54  ;;  %v1068_v23 = vsub.f32 0.0, %v1036_v35  ;;  %v1037_v41 = vand.u32 2147483647, %v3854_v49  ;;  %v1250_v52 = vadd.f32 %v1191_v43, %v994_v31 }
 0x227   :  { %v1253_v3 = vadd.f32 %v1197_v48, %v997_v5  ;;  %v1160_v8 = vadd.f32 1.0, %v2983_v13  ;;  %v1066_v44 = vsub.f32 0.0, %v1034_v1  ;;  %v2985_v29 = vpop.eup %2984  ;;  %v1035_v45 = vand.u32 2147483647, %v3857_v37 }
 0x228   :  { %v1251_v47 = vadd.f32 %v1193_v24, %v995_v38  ;;  %v1114_v11 = vmul.f32 1.442695, %v1068_v23  ;;  %v1158_v30 = vadd.f32 1.0, %v2985_v29  ;;  %v1069_v12 = vsub.f32 0.0, %v1037_v41  ;;  %v2987_v19 = vpop.eup %2986 }
 0x229   :  { %2990 = vlog2.f32 %v1160_v8  ;;  %v1110_v34 = vmul.f32 1.442695, %v1066_v44  ;;  %v1067_v6 = vsub.f32 0.0, %v1035_v45  ;;  %v1281_v48 = vpack.c.bf16 %v1253_v3, %v1252_v18 }
 0x22a   :  { %2992 = vpow2.f32 %v1114_v11  ;;  %v1280_v5 = vpack.c.bf16 %v1251_v47, %v1250_v52  ;;  %v2989_v28 = vpop.eup %2988  ;;  %v1161_v22 = vadd.f32 1.0, %v2987_v19  ;;  %v1116_v35 = vmul.f32 1.442695, %v1069_v12 }
 0x22b   :  { %2994 = vlog2.f32 %v1158_v30  ;;  %v1159_v10 = vadd.f32 1.0, %v2989_v28  ;;  %v1112_v43 = vmul.f32 1.442695, %v1067_v6  ;;  %v1000_v44 = vmax.f32 %v3826_v15, 0.0 }
 0x22c   :  { %2996 = vpow2.f32 %v1110_v34  ;;  %2697 = vmatprep.mubr.bf16.mxu1 %v1280_v5  ;;  %v998_v12 = vmax.f32 %v3829_v60, 0.0  ;;  %v1001_v19 = vmax.f32 %v3834_v51, 0.0  ;;  %v999_v6 = vmax.f32 %v3837_v27, 0.0 }
 0x22d   :  { %2998 = vlog2.f32 %v1161_v22  ;;  %2698 = vmatmul.mubr.bf16.gmra.mrb[52].mxu1 %v1281_v48 }
 0x22e   :  { %3000 = vlog2.f32 %v1159_v10 }
 0x22f   :  { %3002 = vpow2.f32 %v1116_v35 }
 0x230   :  { %3004 = vpow2.f32 %v1112_v43 }
 0x231   :  { %v2663_v54 = vpop.f32.mrb[32].mxu1 }
 0x232   :  { %v3862_v31 = vadd.f32 %v2663_v54, %v3787_v40  ;;  %v927_v38 = vpop.f32.mrb[33].mxu1 }
 0x233   :  { %v3865_v1 = vadd.f32 %v3787_v40, %v927_v38  ;;  %v2664_v13 = vpop.f32.mrb[34].mxu1  ;;  %v2991_v3 = vpop.eup %2990 }
 0x234   :  { %v1040_v24 = vand.u32 2147483647, %v3862_v31  ;;  %v3869_v23 = vadd.f32 %v2664_v13, %v3787_v40  ;;  %v930_v18 = vpop.f32.mrb[35].mxu1  ;;  %v2993_v8 = vpop.eup %2992  ;;  %v1203_v47 = vmul.f32 0.6931472, %v2991_v3 }
 0x235   :  { %v1038_v41 = vand.u32 2147483647, %v3865_v1  ;;  %v3874_v29 = vadd.f32 %v3787_v40, %v930_v18  ;;  %v2995_v52 = vpop.eup %2994  ;;  %v1164_v11 = vadd.f32 1.0, %v2993_v8 }
 0x236   :  { %v1072_v45 = vsub.f32 0.0, %v1040_v24  ;;  %v1041_v30 = vand.u32 2147483647, %v3869_v23  ;;  %v2997_v34 = vpop.eup %2996  ;;  %v1199_v48 = vmul.f32 0.6931472, %v2995_v52  ;;  %v1256_v3 = vadd.f32 %v1203_v47, %v1000_v44 }
 0x237   :  { %v1070_v5 = vsub.f32 0.0, %v1038_v41  ;;  %v2999_v15 = vpop.eup %2998  ;;  %v1162_v28 = vadd.f32 1.0, %v2997_v34  ;;  %3006 = vlog2.f32 %v1164_v11  ;;  %v1039_v38 = vand.u32 2147483647, %v3874_v29 }
 0x238   :  { %v1122_v22 = vmul.f32 1.442695, %v1072_v45  ;;  %v1073_v35 = vsub.f32 0.0, %v1041_v30  ;;  %v3001_v10 = vpop.eup %3000  ;;  %v1205_v43 = vmul.f32 0.6931472, %v2999_v15  ;;  %v1254_v41 = vadd.f32 %v1199_v48, %v998_v12 }
 0x239   :  { %v1118_v54 = vmul.f32 1.442695, %v1070_v5  ;;  %v3003_v13 = vpop.eup %3002  ;;  %v1201_v24 = vmul.f32 0.6931472, %v3001_v10  ;;  %3008 = vlog2.f32 %v1162_v28  ;;  %v1071_v8 = vsub.f32 0.0, %v1039_v38 }
 0x23a   :  { %v1124_v60 = vmul.f32 1.442695, %v1073_v35  ;;  %v3005_v51 = vpop.eup %3004  ;;  %v1257_v18 = vadd.f32 %v1205_v43, %v1001_v19  ;;  %v1165_v27 = vadd.f32 1.0, %v3003_v13  ;;  %3010 = vpow2.f32 %v1122_v22 }
 0x23b   :  { %v1255_v52 = vadd.f32 %v1201_v24, %v999_v6  ;;  %v1163_v45 = vadd.f32 1.0, %v3005_v51  ;;  %3012 = vpow2.f32 %v1118_v54  ;;  %v1120_v30 = vmul.f32 1.442695, %v1071_v8 }
 0x23c   :  { %3014 = vlog2.f32 %v1165_v27  ;;  %v1283_v11 = vpack.c.bf16 %v1257_v18, %v1256_v3  ;;  %v1004_v28 = vmax.f32 %v3842_v25, 0.0  ;;  %v1002_v22 = vmax.f32 %v3846_v0, 0.0 }
 0x23d   :  { %3016 = vlog2.f32 %v1163_v45  ;;  %v1282_v34 = vpack.c.bf16 %v1255_v52, %v1254_v41  ;;  %v1005_v35 = vmax.f32 %v3854_v49, 0.0  ;;  %v1003_v18 = vmax.f32 %v3857_v37, 0.0 }
 0x23e   :  { %3018 = vpow2.f32 %v1124_v60 }
 0x23f   :  { %3020 = vpow2.f32 %v1120_v30  ;;  %2701 = vmatprep.mubr.bf16.mxu1 %v1282_v34 }
 0x240   :  { %2702 = vmatmul.mubr.bf16.gmra.mrb[56].mxu1 %v1283_v11 }
 0x241   :  { %v2667_v44 = vpop.f32.mrb[36].mxu1  ;;  %v3007_v47 = vpop.eup %3006 }
 0x242   :  { %v3882_v19 = vadd.f32 %v2667_v44, %v3787_v40  ;;  %v943_v5 = vpop.f32.mrb[37].mxu1  ;;  %v1211_v51 = vmul.f32 0.6931472, %v3007_v47 }
 0x243   :  { %v3009_v15 = vpop.eup %3008  ;;  %v3885_v12 = vadd.f32 %v3787_v40, %v943_v5  ;;  %v2668_v6 = vpop.f32.mrb[38].mxu1 }
 0x244   :  { %v3011_v48 = vpop.eup %3010  ;;  %v1044_v10 = vand.u32 2147483647, %v3882_v19  ;;  %v946_v43 = vpop.f32.mrb[39].mxu1  ;;  %v1207_v38 = vmul.f32 0.6931472, %v3009_v15  ;;  %v3893_v24 = vadd.f32 %v2668_v6, %v3787_v40 }
 0x245   :  { %v3013_v54 = vpop.eup %3012  ;;  %v1168_v13 = vadd.f32 1.0, %v3011_v48  ;;  %v1042_v3 = vand.u32 2147483647, %v3885_v12  ;;  %v3897_v41 = vadd.f32 %v3787_v40, %v946_v43 }
 0x246   :  { %v3015_v60 = vpop.eup %3014  ;;  %v1166_v25 = vadd.f32 1.0, %v3013_v54  ;;  %v1076_v27 = vsub.f32 0.0, %v1044_v10  ;;  %v1045_v11 = vand.u32 2147483647, %v3893_v24  ;;  %v1258_v44 = vadd.f32 %v1207_v38, %v1002_v22 }
 0x247   :  { %v3017_v0 = vpop.eup %3016  ;;  %v1213_v8 = vmul.f32 0.6931472, %v3015_v60  ;;  %3022 = vlog2.f32 %v1168_v13  ;;  %v1074_v49 = vsub.f32 0.0, %v1042_v3  ;;  %v1043_v43 = vand.u32 2147483647, %v3897_v41 }
 0x248   :  { %v3019_v52 = vpop.eup %3018  ;;  %v1209_v45 = vmul.f32 0.6931472, %v3017_v0  ;;  %3024 = vlog2.f32 %v1166_v25  ;;  %v1130_v30 = vmul.f32 1.442695, %v1076_v27  ;;  %v1077_v10 = vsub.f32 0.0, %v1045_v11 }
 0x249   :  { %v3021_v34 = vpop.eup %3020  ;;  %v1261_v47 = vadd.f32 %v1213_v8, %v1005_v35  ;;  %v1169_v5 = vadd.f32 1.0, %v3019_v52  ;;  %v1126_v37 = vmul.f32 1.442695, %v1074_v49  ;;  %v2671_v15 = vpop.f32.mrb[40].mxu1  ;;  %v1075_v25 = vsub.f32 0.0, %v1043_v43 }
 0x24a   :  { %v1259_v6 = vadd.f32 %v1209_v45, %v1003_v18  ;;  %v1167_v48 = vadd.f32 1.0, %v3021_v34  ;;  %3026 = vpow2.f32 %v1130_v30  ;;  %v959_v54 = vpop.f32.mrb[41].mxu1  ;;  %v3902_v13 = vadd.f32 %v2671_v15, %v3787_v40 }
 0x24b   :  { %3028 = vlog2.f32 %v1169_v5  ;;  %v3905_v3 = vadd.f32 %v3787_v40, %v959_v54  ;;  %v2672_v60 = vpop.f32.mrb[42].mxu1  ;;  %v1132_v22 = vmul.f32 1.442695, %v1077_v10  ;;  %v1260_v0 = vadd.f32 %v1211_v51, %v1004_v28 }
 0x24c   :  { %3030 = vlog2.f32 %v1167_v48  ;;  %v3908_v35 = vadd.f32 %v2672_v60, %v3787_v40  ;;  %v1284_v38 = vpack.c.bf16 %v1259_v6, %v1258_v44  ;;  %v962_v18 = vpop.f32.mrb[43].mxu1  ;;  %v1048_v27 = vand.u32 2147483647, %v3902_v13 }
 0x24d   :  { %3032 = vpow2.f32 %v1126_v37  ;;  %v1046_v8 = vand.u32 2147483647, %v3905_v3  ;;  %v1128_v49 = vmul.f32 1.442695, %v1075_v25  ;;  %v3914_v30 = vadd.f32 %v3787_v40, %v962_v18 }
 0x24e   :  { %3034 = vpow2.f32 %v1132_v22  ;;  %2705 = vmatprep.mubr.bf16.mxu1 %v1284_v38  ;;  %v1080_v52 = vsub.f32 0.0, %v1048_v27  ;;  %v1049_v45 = vand.u32 2147483647, %v3908_v35  ;;  %v1285_v34 = vpack.c.bf16 %v1261_v47, %v1260_v0 }
 0x24f   :  { %v1078_v11 = vsub.f32 0.0, %v1046_v8  ;;  %3036 = vpow2.f32 %v1128_v49  ;;  %v1008_v28 = vmax.f32 %v3862_v31, 0.0  ;;  %v1047_v48 = vand.u32 2147483647, %v3914_v30 }
 0x250   :  { %v1138_v5 = vmul.f32 1.442695, %v1080_v52  ;;  %v1081_v37 = vsub.f32 0.0, %v1049_v45  ;;  %2706 = vmatmul.mubr.bf16.gmra.mrb[60].mxu1 %v1285_v34  ;;  %v1006_v54 = vmax.f32 %v3865_v1, 0.0  ;;  %v1009_v43 = vmax.f32 %v3869_v23, 0.0 }
 0x251   :  { %v3023_v44 = vpop.eup %3022  ;;  %v2675_v15 = vpop.f32.mrb[44].mxu1  ;;  %v1134_v51 = vmul.f32 1.442695, %v1078_v11  ;;  %v1007_v18 = vmax.f32 %v3874_v29, 0.0  ;;  %v1079_v31 = vsub.f32 0.0, %v1047_v48 }
 0x252   :  { %v3025_v6 = vpop.eup %3024  ;;  %v3919_v10 = vadd.f32 %v2675_v15, %v3787_v40  ;;  %3038 = vpow2.f32 %v1138_v5  ;;  %v1140_v47 = vmul.f32 1.442695, %v1081_v37  ;;  %v975_v60 = vpop.f32.mrb[45].mxu1  ;;  %v1219_v0 = vmul.f32 0.6931472, %v3023_v44 }
 0x253   :  { %v1215_v38 = vmul.f32 0.6931472, %v3025_v6  ;;  %3040 = vpow2.f32 %v1134_v51  ;;  %v2676_v25 = vpop.f32.mrb[46].mxu1  ;;  %v1136_v23 = vmul.f32 1.442695, %v1079_v31  ;;  %v3926_v11 = vadd.f32 %v3787_v40, %v975_v60 }
 0x254   :  { %v3027_v22 = vpop.eup %3026  ;;  %3042 = vpow2.f32 %v1140_v47  ;;  %v1052_v49 = vand.u32 2147483647, %v3919_v10  ;;  %v978_v52 = vpop.f32.mrb[47].mxu1  ;;  %v3929_v34 = vadd.f32 %v2676_v25, %v3787_v40 }
 0x255   :  { %v3029_v27 = vpop.eup %3028  ;;  %v1172_v8 = vadd.f32 1.0, %v3027_v22  ;;  %v3932_v44 = vadd.f32 %v3787_v40, %v978_v52  ;;  %v1262_v6 = vadd.f32 %v1215_v38, %v1006_v54  ;;  %v1050_v60 = vand.u32 2147483647, %v3926_v11 }
 0x256   :  { %v3031_v1 = vpop.eup %3030  ;;  %v1221_v45 = vmul.f32 0.6931472, %v3029_v27  ;;  %v1084_v37 = vsub.f32 0.0, %v1052_v49  ;;  %v1264_v27 = vadd.f32 %v1219_v0, %v1008_v28  ;;  %v1053_v25 = vand.u32 2147483647, %v3929_v34 }
 0x257   :  { %v3033_v29 = vpop.eup %3032  ;;  %v1217_v5 = vmul.f32 0.6931472, %v3031_v1  ;;  %3044 = vlog2.f32 %v1172_v8  ;;  %v1082_v8 = vsub.f32 0.0, %v1050_v60  ;;  %v1051_v40 = vand.u32 2147483647, %v3932_v44 }
 0x258   :  { %v3035_v15 = vpop.eup %3034  ;;  %v1265_v51 = vadd.f32 %v1221_v45, %v1009_v43  ;;  %v1170_v48 = vadd.f32 1.0, %v3033_v29  ;;  %3046 = vpow2.f32 %v1136_v23  ;;  %v1146_v31 = vmul.f32 1.442695, %v1084_v37 }
 0x259   :  { %v1263_v47 = vadd.f32 %v1217_v5, %v1007_v18  ;;  %v1173_v22 = vadd.f32 1.0, %v3035_v15  ;;  %v3037_v1 = vpop.eup %3036  ;;  %v1085_v54 = vsub.f32 0.0, %v1053_v25  ;;  %v1142_v18 = vmul.f32 1.442695, %v1082_v8 }
 0x25a   :  { %3048 = vlog2.f32 %v1170_v48  ;;  %v1171_v52 = vadd.f32 1.0, %v3037_v1  ;;  %v1287_v43 = vpack.c.bf16 %v1265_v51, %v1264_v27  ;;  %v1083_v45 = vsub.f32 0.0, %v1051_v40 }
 0x25b   :  { %3050 = vlog2.f32 %v1173_v22  ;;  %v1286_v49 = vpack.c.bf16 %v1263_v47, %v1262_v6  ;;  %v1148_v5 = vmul.f32 1.442695, %v1085_v54  ;;  %v1012_v27 = vmax.f32 %v3882_v19, 0.0 }
 0x25c   :  { %3052 = vpow2.f32 %v1146_v31  ;;  %v3039_v38 = vpop.eup %3038  ;;  %v1144_v15 = vmul.f32 1.442695, %v1083_v45  ;;  %v1013_v25 = vmax.f32 %v3893_v24, 0.0 }
 0x25d   :  { %2709 = vmatprep.mubr.bf16.mxu1 %v1286_v49  ;;  %v3041_v23 = vpop.eup %3040  ;;  %3054 = vlog2.f32 %v1171_v52  ;;  %v1176_v28 = vadd.f32 1.0, %v3039_v38  ;;  %v1010_v38 = vmax.f32 %v3885_v12, 0.0 }
 0x25e   :  { %2710 = vmatmul.mubr.bf16.gmra.mrb[64].mxu1 %v1287_v43  ;;  %v3043_v0 = vpop.eup %3042  ;;  %v1174_v29 = vadd.f32 1.0, %v3041_v23  ;;  %3056 = vpow2.f32 %v1142_v18  ;;  %v1011_v18 = vmax.f32 %v3897_v41, 0.0 }
 0x25f   :  { %3058 = vlog2.f32 %v1176_v28  ;;  %v1177_v37 = vadd.f32 1.0, %v3043_v0 }
 0x260   :  { %3060 = vlog2.f32 %v1174_v29 }
 0x261   :  { %v3045_v6 = vpop.eup %3044  ;;  %3062 = vlog2.f32 %v1177_v37 }
 0x262   :  { %v3047_v48 = vpop.eup %3046  ;;  %3064 = vpow2.f32 %v1148_v5  ;;  %v1227_v22 = vmul.f32 0.6931472, %v3045_v6 }
 0x263   :  { %v1175_v51 = vadd.f32 1.0, %v3047_v48  ;;  %3066 = vpow2.f32 %v1144_v15  ;;  %v1016_v15 = vmax.f32 %v3902_v13, 0.0  ;;  %v1017_v48 = vmax.f32 %v3908_v35, 0.0 }
 0x264   :  { %v3049_v47 = vpop.eup %3048  ;;  %v1268_v49 = vadd.f32 %v1227_v22, %v1012_v27 }
 0x265   :  { %v3051_v31 = vpop.eup %3050  ;;  %3068 = vlog2.f32 %v1175_v51  ;;  %v1223_v8 = vmul.f32 0.6931472, %v3049_v47 }
 0x266   :  { %v3053_v60 = vpop.eup %3052  ;;  %v1229_v1 = vmul.f32 0.6931472, %v3051_v31 }
 0x267   :  { %v3055_v40 = vpop.eup %3054  ;;  %v1180_v54 = vadd.f32 1.0, %v3053_v60  ;;  %v1266_v5 = vadd.f32 %v1223_v8, %v1010_v38  ;;  %v1015_v8 = vmax.f32 %v3914_v30, 0.0  ;;  %v1021_v30 = vmax.f32 %v3929_v34, 0.0  ;;  %v2818_v34 = vld [vmem:[#allocation2 + $0x20] sm:$0xff]  }
 0x268   :  { %v1269_v52 = vadd.f32 %v1229_v1, %v1013_v25  ;;  %v3057_v43 = vpop.eup %3056  ;;  %v1225_v45 = vmul.f32 0.6931472, %v3055_v40  ;;  %v1014_v1 = vmax.f32 %v3905_v3, 0.0  ;;  %v1020_v3 = vmax.f32 %v3919_v10, 0.0  ;;  %v2817_v10 = vld [vmem:[#allocation2 + $0x18] sm:$0xff]  }
 0x269   :  { %v3059_v23 = vpop.eup %3058  ;;  %v1178_v28 = vadd.f32 1.0, %v3057_v43  ;;  %3070 = vlog2.f32 %v1180_v54 }
 0x26a   :  { %v1289_v0 = vpack.c.bf16 %v1269_v52, %v1268_v49  ;;  %v3061_v29 = vpop.eup %3060  ;;  %v1267_v19 = vadd.f32 %v1225_v45, %v1011_v18  ;;  %v1235_v37 = vmul.f32 0.6931472, %v3059_v23 }
 0x26b   :  { %v3063_v24 = vpop.eup %3062  ;;  %3072 = vlog2.f32 %v1178_v28  ;;  %v1231_v41 = vmul.f32 0.6931472, %v3061_v29  ;;  %v1019_v29 = vmax.f32 %v3932_v44, 0.0  ;;  %v2820_v44 = vld [vmem:[#allocation2 + $0x30] sm:$0xff]  }
 0x26c   :  { %v3065_v6 = vpop.eup %3064  ;;  %v1237_v51 = vmul.f32 0.6931472, %v3063_v24  ;;  %v1288_v12 = vpack.c.bf16 %v1267_v19, %v1266_v5  ;;  %v1272_v60 = vadd.f32 %v1235_v37, %v1016_v15 }
 0x26d   :  { %v3067_v47 = vpop.eup %3066  ;;  %v1181_v22 = vadd.f32 1.0, %v3065_v6  ;;  %v1270_v40 = vadd.f32 %v1231_v41, %v1014_v1  ;;  %v3952_v41 = vld [vmem:[%s4238_s6] ss:$0 sm:$0xff] }
 0x26e   :  { %v1273_v27 = vadd.f32 %v1237_v51, %v1017_v48  ;;  %v1179_v25 = vadd.f32 1.0, %v3067_v47  ;;  %2713 = vmatprep.mubr.bf16.mxu1 %v1288_v12  ;;  %v2816_v51 = vld [vmem:[#allocation2 + $0x10] sm:$0xff]   ;;  %v2821_v12 = vld [vmem:[#allocation2 + $0x38] sm:$0xff]  }
 0x26f   :  { %v3069_v31 = vpop.eup %3068  ;;  %3074 = vlog2.f32 %v1181_v22  ;;  %2714 = vmatmul.mubr.bf16.gmra.mrb[68].mxu1 %v1289_v0  ;;  %v1018_v0 = vmax.f32 %v3926_v11, 0.0  ;;  %2729 = vmatprep.subr.bf16.mxu0 %v2816_v51  ;;  %v2819_v11 = vld [vmem:[#allocation2 + $0x28] sm:$0xff]  }
 0x270   :  { %v1233_v13 = vmul.f32 0.6931472, %v3069_v31  ;;  %3076 = vlog2.f32 %v1179_v25  ;;  %v1291_v35 = vpack.c.bf16 %v1273_v27, %v1272_v60  ;;  %2730 = vmatpush3.bf16.msra.mxu0 %v2816_v51 }
 0x271   :  { %2731 = vmatprep.subr.bf16.mxu0 %v2817_v10 }
 0x272   :  { %v1271_v49 = vadd.f32 %v1233_v13, %v1015_v8 }
 0x273   :  { %v3071_v54 = vpop.eup %3070 }
 0x274   :  { %v1290_v52 = vpack.c.bf16 %v1271_v49, %v1270_v40  ;;  %v1243_v38 = vmul.f32 0.6931472, %v3071_v54  ;;  %2732 = vmatpush3.bf16.msra.mxu0 %v2817_v10 }
 0x275   :  { %v3073_v43 = vpop.eup %3072  ;;  %2733 = vmatprep.subr.bf16.mxu0 %v2818_v34 }
 0x276   :  { %2717 = vmatprep.mubr.bf16.mxu1 %v1290_v52  ;;  %v1239_v45 = vmul.f32 0.6931472, %v3073_v43  ;;  %v1276_v19 = vadd.f32 %v1243_v38, %v1020_v3 }
 0x277   :  { %2718 = vmatmul.mubr.bf16.gmra.mrb[72].mxu1 %v1291_v35 }
 0x278   :  { %v1274_v24 = vadd.f32 %v1239_v45, %v1018_v0  ;;  %2734 = vmatpush3.bf16.msra.mxu0 %v2818_v34 }
 0x279   :  { %v3075_v18 = vpop.eup %3074  ;;  %2735 = vmatprep.subr.bf16.mxu0 %v2819_v11 }
 0x27a   :  { %v3077_v23 = vpop.eup %3076  ;;  %v1245_v28 = vmul.f32 0.6931472, %v3075_v18 }
 0x27b   :  { %v1241_v5 = vmul.f32 0.6931472, %v3077_v23 }
 0x27c   :  { %v1277_v37 = vadd.f32 %v1245_v28, %v1021_v30  ;;  %2736 = vmatpush3.bf16.msra.mxu0 %v2819_v11 }
 0x27d   :  { %v1275_v15 = vadd.f32 %v1241_v5, %v1019_v29  ;;  %2737 = vmatprep.subr.bf16.mxu0 %v2820_v44 }
 0x27e   :  { %v1293_v6 = vpack.c.bf16 %v1277_v37, %v1276_v19 }
 0x27f   :  { %v1292_v48 = vpack.c.bf16 %v1275_v15, %v1274_v24 }
 0x280   :  { %2738 = vmatpush3.bf16.msra.mxu0 %v2820_v44 }
 0x281   :  { %2721 = vmatprep.mubr.bf16.mxu1 %v1292_v48  ;;  %2739 = vmatprep.subr.bf16.mxu0 %v2821_v12 }
 0x282   :  { %2722 = vmatmul.mubr.bf16.gmra.mrb[76].mxu1 %v1293_v6 }
 0x284   :  { %2740 = vmatpush3.bf16.msra.mxu0 %v2821_v12 }
 0x2ef   :  { %v2695_v47 = vpop.f32.mrb[48].mxu1 }
 0x2f0   :  { %v1521_v22 = vadd.f32 %v2695_v47, %v3527_v53  ;;  %v1392_v31 = vpop.f32.mrb[49].mxu1 }
 0x2f1   :  { %v1519_v60 = vadd.f32 %v1392_v31, %v3503_v32  ;;  %v2696_v27 = vpop.f32.mrb[50].mxu1 }
 0x2f2   :  { %v1560_v25 = vadd.f32 %v3952_v41, %v1521_v22  ;;  %v1522_v1 = vadd.f32 %v2696_v27, %v3533_v59  ;;  %v1395_v8 = vpop.f32.mrb[51].mxu1 }
 0x2f3   :  { %v1558_v13 = vadd.f32 %v3952_v41, %v1519_v60  ;;  %v1520_v35 = vadd.f32 %v1395_v8, %v3509_v36 }
 0x2f4   :  { %v1592_v40 = vsub.f32 0.0, %v1560_v25  ;;  %v1561_v49 = vadd.f32 %v3952_v41, %v1522_v1 }
 0x2f5   :  { %v1590_v52 = vsub.f32 0.0, %v1558_v13  ;;  %v1559_v54 = vadd.f32 %v3952_v41, %v1520_v35 }
 0x2f6   :  { %v1626_v53 = vmul.f32 1.442695, %v1592_v40  ;;  %v1593_v43 = vsub.f32 0.0, %v1561_v49 }
 0x2f7   :  { %v1622_v38 = vmul.f32 1.442695, %v1590_v52  ;;  %v1591_v32 = vsub.f32 0.0, %v1559_v54 }
 0x2f8   :  { %3078 = vpow2.f32 %v1626_v53  ;;  %v1628_v18 = vmul.f32 1.442695, %v1593_v43 }
 0x2f9   :  { %3080 = vpow2.f32 %v1622_v38  ;;  %v1624_v45 = vmul.f32 1.442695, %v1591_v32 }
 0x2fa   :  { %3082 = vpow2.f32 %v1628_v18 }
 0x2fb   :  { %3084 = vpow2.f32 %v1624_v45 }
 0x300   :  { %v2699_v59 = vpop.f32.mrb[52].mxu1 }
 0x301   :  { %v1525_v23 = vadd.f32 %v2699_v59, %v3574_v55  ;;  %v1408_v36 = vpop.f32.mrb[53].mxu1 }
 0x302   :  { %v3079_v3 = vpop.eup %3078  ;;  %v1523_v30 = vadd.f32 %v1408_v36, %v3551_v14  ;;  %v2700_v28 = vpop.f32.mrb[54].mxu1 }
 0x303   :  { %v3081_v0 = vpop.eup %3080  ;;  %v1688_v29 = vadd.f32 1.0, %v3079_v3  ;;  %v1564_v5 = vadd.f32 %v3952_v41, %v1525_v23  ;;  %v1526_v19 = vadd.f32 %v2700_v28, %v3581_v4  ;;  %v1411_v37 = vpop.f32.mrb[55].mxu1 }
 0x304   :  { %v3083_v24 = vpop.eup %3082  ;;  %v1686_v15 = vadd.f32 1.0, %v3081_v0  ;;  %v1562_v6 = vadd.f32 %v3952_v41, %v1523_v30  ;;  %v1524_v48 = vadd.f32 %v1411_v37, %v3557_v21 }
 0x305   :  { %v3085_v51 = vpop.eup %3084  ;;  %3086 = vrcp.f32 %v1688_v29  ;;  %v1689_v55 = vadd.f32 1.0, %v3083_v24  ;;  %v1596_v10 = vsub.f32 0.0, %v1564_v5  ;;  %v1565_v14 = vadd.f32 %v3952_v41, %v1526_v19 }
 0x306   :  { %3088 = vrcp.f32 %v1686_v15  ;;  %v1687_v34 = vadd.f32 1.0, %v3085_v51  ;;  %v1594_v11 = vsub.f32 0.0, %v1562_v6  ;;  %v1563_v44 = vadd.f32 %v3952_v41, %v1524_v48 }
 0x307   :  { %3090 = vrcp.f32 %v1689_v55  ;;  %v1634_v4 = vmul.f32 1.442695, %v1596_v10  ;;  %v1597_v12 = vsub.f32 0.0, %v1565_v14 }
 0x308   :  { %3092 = vrcp.f32 %v1687_v34  ;;  %v1630_v47 = vmul.f32 1.442695, %v1594_v11  ;;  %v1595_v22 = vsub.f32 0.0, %v1563_v44 }
 0x309   :  { %3094 = vpow2.f32 %v1634_v4  ;;  %v1636_v31 = vmul.f32 1.442695, %v1597_v12 }
 0x30a   :  { %3096 = vpow2.f32 %v1630_v47  ;;  %v1632_v21 = vmul.f32 1.442695, %v1595_v22 }
 0x30b   :  { %3098 = vpow2.f32 %v1636_v31 }
 0x30c   :  { %3100 = vpow2.f32 %v1632_v21 }
 0x30f   :  { %v3970_v60 = vpop.eup %3086 }
 0x310   :  { %v3972_v27 = vpop.eup %3088 }
 0x311   :  { %v3974_v25 = vpop.eup %3090 }
 0x312   :  { %v3976_v1 = vpop.eup %3092  ;;  %v1783_v54 = vpack.c.bf16 %v3974_v25, %v3970_v60 }
 0x313   :  { %v3095_v8 = vpop.eup %3094  ;;  %v2703_v13 = vpop.f32.mrb[56].mxu1  ;;  %v1782_v35 = vpack.c.bf16 %v3976_v1, %v3972_v27 }
 0x314   :  { %v3097_v40 = vpop.eup %3096  ;;  %v1529_v49 = vadd.f32 %v2703_v13, %v3616_v16  ;;  %v1424_v52 = vpop.f32.mrb[57].mxu1  ;;  %v1692_v45 = vadd.f32 1.0, %v3095_v8 }
 0x315   :  { %v3099_v53 = vpop.eup %3098  ;;  %v1690_v43 = vadd.f32 1.0, %v3097_v40  ;;  %v1527_v38 = vadd.f32 %v1424_v52, %v3595_v46  ;;  %v2704_v32 = vpop.f32.mrb[58].mxu1  ;;  %2741 = vmatprep.mubr.bf16.mxu0 %v1782_v35 }
 0x316   :  { %v3101_v18 = vpop.eup %3100  ;;  %v1693_v59 = vadd.f32 1.0, %v3099_v53  ;;  %v1568_v23 = vadd.f32 %v3952_v41, %v1529_v49  ;;  %v1530_v36 = vadd.f32 %v2704_v32, %v3621_v9  ;;  %v1427_v3 = vpop.f32.mrb[59].mxu1  ;;  %2742 = vmatmul.mubr.bf16.vlgmr.msra.gmra.mrb[48].mxu0 %v1783_v54 }
 0x317   :  { %3102 = vrcp.f32 %v1690_v43  ;;  %v1691_v16 = vadd.f32 1.0, %v3101_v18  ;;  %v1566_v30 = vadd.f32 %v3952_v41, %v1527_v38  ;;  %v1528_v28 = vadd.f32 %v1427_v3, %v3600_v61 }
 0x318   :  { %3104 = vrcp.f32 %v1693_v59  ;;  %v1600_v0 = vsub.f32 0.0, %v1568_v23  ;;  %v1569_v46 = vadd.f32 %v3952_v41, %v1530_v36 }
 0x319   :  { %3106 = vrcp.f32 %v1691_v16  ;;  %v1598_v29 = vsub.f32 0.0, %v1566_v30  ;;  %v1567_v5 = vadd.f32 %v3952_v41, %v1528_v28 }
 0x31a   :  { %3108 = vrcp.f32 %v1692_v45  ;;  %v1642_v19 = vmul.f32 1.442695, %v1600_v0  ;;  %v1601_v37 = vsub.f32 0.0, %v1569_v46 }
 0x31b   :  { %v1638_v9 = vmul.f32 1.442695, %v1598_v29  ;;  %v1599_v24 = vsub.f32 0.0, %v1567_v5 }
 0x31c   :  { %3110 = vpow2.f32 %v1642_v19  ;;  %v1644_v15 = vmul.f32 1.442695, %v1601_v37 }
 0x31d   :  { %3112 = vpow2.f32 %v1638_v9  ;;  %v1640_v6 = vmul.f32 1.442695, %v1599_v24 }
 0x31e   :  { %3114 = vpow2.f32 %v1644_v15 }
 0x31f   :  { %3116 = vpow2.f32 %v1640_v6 }
 0x321   :  { %v3990_v61 = vpop.eup %3102 }
 0x322   :  { %v3992_v48 = vpop.eup %3104 }
 0x323   :  { %v3994_v51 = vpop.eup %3106  ;;  %v2707_v14 = vpop.f32.mrb[60].mxu1 }
 0x324   :  { %v3996_v55 = vpop.eup %3108  ;;  %v1784_v10 = vpack.c.bf16 %v3994_v51, %v3990_v61  ;;  %v1533_v44 = vadd.f32 %v2707_v14, %v3657_v42  ;;  %v1440_v4 = vpop.f32.mrb[61].mxu1 }
 0x325   :  { %v1785_v34 = vpack.c.bf16 %v3992_v48, %v3996_v55  ;;  %v1531_v47 = vadd.f32 %v1440_v4, %v3639_v2  ;;  %v2708_v22 = vpop.f32.mrb[62].mxu1 }
 0x326   :  { %v3111_v11 = vpop.eup %3110  ;;  %2745 = vmatprep.mubr.bf16.mxu0 %v1784_v10  ;;  %v1572_v8 = vadd.f32 %v3952_v41, %v1533_v44  ;;  %v1534_v13 = vadd.f32 %v2708_v22, %v3662_v57  ;;  %v1443_v35 = vpop.f32.mrb[63].mxu1 }
 0x327   :  { %v3113_v12 = vpop.eup %3112  ;;  %2746 = vmatmul.mubr.bf16.gmra.mrb[52].mxu0 %v1785_v34  ;;  %v1696_v49 = vadd.f32 1.0, %v3111_v11  ;;  %v1570_v54 = vadd.f32 %v3952_v41, %v1531_v47  ;;  %v1532_v42 = vadd.f32 %v1443_v35, %v3645_v33 }
 0x328   :  { %v3115_v31 = vpop.eup %3114  ;;  %v1694_v21 = vadd.f32 1.0, %v3113_v12  ;;  %v1604_v43 = vsub.f32 0.0, %v1572_v8  ;;  %v1573_v2 = vadd.f32 %v3952_v41, %v1534_v13 }
 0x329   :  { %v3117_v40 = vpop.eup %3116  ;;  %v1697_v52 = vadd.f32 1.0, %v3115_v31  ;;  %v1602_v38 = vsub.f32 0.0, %v1570_v54  ;;  %v1571_v32 = vadd.f32 %v3952_v41, %v1532_v42 }
 0x32a   :  { %3118 = vrcp.f32 %v1694_v21  ;;  %v1695_v53 = vadd.f32 1.0, %v3117_v40  ;;  %v1650_v18 = vmul.f32 1.442695, %v1604_v43  ;;  %v1605_v57 = vsub.f32 0.0, %v1573_v2 }
 0x32b   :  { %3120 = vrcp.f32 %v1697_v52  ;;  %v1646_v45 = vmul.f32 1.442695, %v1602_v38  ;;  %v1603_v59 = vsub.f32 0.0, %v1571_v32 }
 0x32c   :  { %3122 = vrcp.f32 %v1695_v53  ;;  %v1652_v23 = vmul.f32 1.442695, %v1605_v57 }
 0x32d   :  { %3124 = vrcp.f32 %v1696_v49  ;;  %v1648_v36 = vmul.f32 1.442695, %v1603_v59 }
 0x32e   :  { %3126 = vpow2.f32 %v1650_v18 }
 0x32f   :  { %3128 = vpow2.f32 %v1646_v45 }
 0x330   :  { %3130 = vpow2.f32 %v1652_v23 }
 0x331   :  { %3132 = vpow2.f32 %v1648_v36  ;;  %v2711_v33 = vpop.f32.mrb[64].mxu1 }
 0x332   :  { %v1537_v3 = vadd.f32 %v2711_v33, %v3693_v56  ;;  %v1456_v16 = vpop.f32.mrb[65].mxu1 }
 0x333   :  { %v1535_v30 = vadd.f32 %v1456_v16, %v3675_v50  ;;  %v2712_v28 = vpop.f32.mrb[66].mxu1 }
 0x334   :  { %v4012_v0 = vpop.eup %3118  ;;  %v1576_v46 = vadd.f32 %v3952_v41, %v1537_v3  ;;  %v1538_v29 = vadd.f32 %v2712_v28, %v3699_v7  ;;  %v1459_v5 = vpop.f32.mrb[67].mxu1 }
 0x335   :  { %v4016_v19 = vpop.eup %3120  ;;  %v1574_v37 = vadd.f32 %v3952_v41, %v1535_v30  ;;  %v1536_v9 = vadd.f32 %v1459_v5, %v3683_v20 }
 0x336   :  { %v4020_v24 = vpop.eup %3122  ;;  %v1608_v56 = vsub.f32 0.0, %v1576_v46  ;;  %v1577_v15 = vadd.f32 %v3952_v41, %v1538_v29 }
 0x337   :  { %v4023_v50 = vpop.eup %3124  ;;  %v1606_v6 = vsub.f32 0.0, %v1574_v37  ;;  %v1575_v10 = vadd.f32 %v3952_v41, %v1536_v9  ;;  %v1786_v7 = vpack.c.bf16 %v4020_v24, %v4012_v0 }
 0x338   :  { %v3127_v14 = vpop.eup %3126  ;;  %v1658_v34 = vmul.f32 1.442695, %v1608_v56  ;;  %v1609_v11 = vsub.f32 0.0, %v1577_v15  ;;  %v1787_v44 = vpack.c.bf16 %v4016_v19, %v4023_v50 }
 0x339   :  { %v3129_v20 = vpop.eup %3128  ;;  %v1700_v4 = vadd.f32 1.0, %v3127_v14  ;;  %v1607_v12 = vsub.f32 0.0, %v1575_v10  ;;  %2749 = vmatprep.mubr.bf16.mxu0 %v1786_v7  ;;  %v1654_v8 = vmul.f32 1.442695, %v1606_v6 }
 0x33a   :  { %v3131_v47 = vpop.eup %3130  ;;  %v1698_v22 = vadd.f32 1.0, %v3129_v20  ;;  %3134 = vpow2.f32 %v1658_v34  ;;  %2750 = vmatmul.mubr.bf16.gmra.mrb[56].mxu0 %v1787_v44  ;;  %v1660_v35 = vmul.f32 1.442695, %v1609_v11 }
 0x33b   :  { %v3133_v31 = vpop.eup %3132  ;;  %3136 = vrcp.f32 %v1700_v4  ;;  %v1701_v21 = vadd.f32 1.0, %v3131_v47  ;;  %v1656_v40 = vmul.f32 1.442695, %v1607_v12  ;;  %v4252_v12 = vld [vmem:[#allocation9_spill] sm:$0xff] }
 0x33c   :  { %3138 = vrcp.f32 %v1698_v22  ;;  %v1699_v13 = vadd.f32 1.0, %v3133_v31 }
 0x33d   :  { %3140 = vrcp.f32 %v1701_v21  ;;  %v4253_v21 = vld [vmem:[#allocation8_spill] sm:$0xff] }
 0x33e   :  { %3142 = vrcp.f32 %v1699_v13 }
 0x33f   :  { %3144 = vpow2.f32 %v1654_v8 }
 0x340   :  { %3146 = vpow2.f32 %v1660_v35 }
 0x341   :  { %3148 = vpow2.f32 %v1656_v40 }
 0x342   :  { %v2715_v49 = vpop.f32.mrb[68].mxu1 }
 0x343   :  { %v1541_v54 = vadd.f32 %v2715_v49, %v3727_v62  ;;  %v1472_v42 = vpop.f32.mrb[69].mxu1 }
 0x344   :  { %v3135_v52 = vpop.eup %3134  ;;  %v1539_v43 = vadd.f32 %v1472_v42, %v3707_v58  ;;  %v2716_v2 = vpop.f32.mrb[70].mxu1 }
 0x345   :  { %v4031_v53 = vpop.eup %3136  ;;  %v1580_v32 = vadd.f32 %v3952_v41, %v1541_v54  ;;  %v1542_v18 = vadd.f32 %v2716_v2, %v3733_v26  ;;  %v1475_v57 = vpop.f32.mrb[71].mxu1  ;;  %v1704_v59 = vadd.f32 1.0, %v3135_v52 }
 0x346   :  { %v4034_v38 = vpop.eup %3138  ;;  %v1578_v23 = vadd.f32 %v3952_v41, %v1539_v43  ;;  %v1540_v62 = vadd.f32 %v1475_v57, %v3712_v17 }
 0x347   :  { %v4038_v45 = vpop.eup %3140  ;;  %v1612_v33 = vsub.f32 0.0, %v1580_v32  ;;  %v1581_v58 = vadd.f32 %v3952_v41, %v1542_v18  ;;  %3150 = vrcp.f32 %v1704_v59  ;;  %v4254_v59 = vld [vmem:[#allocation12_spill] sm:$0xff] }
 0x348   :  { %v4042_v36 = vpop.eup %3142  ;;  %v1610_v16 = vsub.f32 0.0, %v1578_v23  ;;  %v1579_v30 = vadd.f32 %v3952_v41, %v1540_v62  ;;  %v1789_v5 = vpack.c.bf16 %v4038_v45, %v4031_v53 }
 0x349   :  { %v3145_v3 = vpop.eup %3144  ;;  %v1788_v26 = vpack.c.bf16 %v4042_v36, %v4034_v38  ;;  %v1613_v29 = vsub.f32 0.0, %v1581_v58  ;;  %v1666_v9 = vmul.f32 1.442695, %v1612_v33  ;;  %v4255_v58 = vld [vmem:[#allocation10_spill] sm:$0xff] }
 0x34a   :  { %v3147_v28 = vpop.eup %3146  ;;  %v1702_v46 = vadd.f32 1.0, %v3145_v3  ;;  %v1611_v56 = vsub.f32 0.0, %v1579_v30  ;;  %v2719_v15 = vpop.f32.mrb[72].mxu1  ;;  %v1662_v10 = vmul.f32 1.442695, %v1610_v16 }
 0x34b   :  { %v3149_v37 = vpop.eup %3148  ;;  %v1705_v17 = vadd.f32 1.0, %v3147_v28  ;;  %2753 = vmatprep.mubr.bf16.mxu0 %v1788_v26  ;;  %v1545_v7 = vadd.f32 %v2719_v15, %v3538_v63  ;;  %v1488_v14 = vpop.f32.mrb[73].mxu1  ;;  %v1668_v34 = vmul.f32 1.442695, %v1613_v29  ;;  %v4256_v28 = vld [vmem:[#allocation13_spill] sm:$0xff] }
 0x34c   :  { %3152 = vrcp.f32 %v1702_v46  ;;  %v1703_v6 = vadd.f32 1.0, %v3149_v37  ;;  %2754 = vmatmul.mubr.bf16.gmra.mrb[60].mxu0 %v1789_v5  ;;  %v1543_v11 = vadd.f32 %v1488_v14, %v3514_v39  ;;  %v2720_v44 = vpop.f32.mrb[74].mxu1  ;;  %v1664_v20 = vmul.f32 1.442695, %v1611_v56 }
 0x34d   :  { %3154 = vrcp.f32 %v1705_v17  ;;  %v1584_v4 = vadd.f32 %v3952_v41, %v1545_v7  ;;  %v1546_v47 = vadd.f32 %v2720_v44, %v4252_v12  ;;  %v1491_v22 = vpop.f32.mrb[75].mxu1 }
 0x34e   :  { %3156 = vrcp.f32 %v1703_v6  ;;  %v1582_v31 = vadd.f32 %v3952_v41, %v1543_v11  ;;  %v1544_v8 = vadd.f32 %v1491_v22, %v4253_v21 }
 0x34f   :  { %3158 = vpow2.f32 %v1666_v9  ;;  %v1616_v63 = vsub.f32 0.0, %v1584_v4  ;;  %v1585_v13 = vadd.f32 %v3952_v41, %v1546_v47  ;;  %v4257_v9 = vld [vmem:[#allocation11_spill] sm:$0xff] }
 0x350   :  { %3160 = vpow2.f32 %v1662_v10  ;;  %v1614_v35 = vsub.f32 0.0, %v1582_v31  ;;  %v1583_v39 = vadd.f32 %v3952_v41, %v1544_v8 }
 0x351   :  { %3162 = vpow2.f32 %v1668_v34  ;;  %v1674_v40 = vmul.f32 1.442695, %v1616_v63  ;;  %v1617_v49 = vsub.f32 0.0, %v1585_v13  ;;  %v4058_v43 = vpop.eup %3150 }
 0x352   :  { %3164 = vpow2.f32 %v1664_v20  ;;  %v1670_v52 = vmul.f32 1.442695, %v1614_v35  ;;  %v1615_v54 = vsub.f32 0.0, %v1583_v39 }
 0x353   :  { %3166 = vpow2.f32 %v1674_v40  ;;  %v1676_v42 = vmul.f32 1.442695, %v1617_v49 }
 0x354   :  { %3168 = vpow2.f32 %v1670_v52  ;;  %v1672_v2 = vmul.f32 1.442695, %v1615_v54 }
 0x355   :  { %3170 = vpow2.f32 %v1676_v42  ;;  %v2723_v18 = vpop.f32.mrb[76].mxu1 }
 0x356   :  { %v4060_v32 = vpop.eup %3152  ;;  %3172 = vpow2.f32 %v1672_v2  ;;  %v1549_v23 = vadd.f32 %v2723_v18, %v4254_v59  ;;  %v1504_v62 = vpop.f32.mrb[77].mxu1 }
 0x357   :  { %v4062_v57 = vpop.eup %3154  ;;  %v1547_v3 = vadd.f32 %v1504_v62, %v4255_v58  ;;  %v2724_v16 = vpop.f32.mrb[78].mxu1 }
 0x358   :  { %v4065_v33 = vpop.eup %3156  ;;  %v1588_v26 = vadd.f32 %v3952_v41, %v1549_v23  ;;  %v1550_v46 = vadd.f32 %v2724_v16, %v4256_v28  ;;  %v1507_v29 = vpop.f32.mrb[79].mxu1  ;;  %v1791_v15 = vpack.c.bf16 %v4062_v57, %v4058_v43 }
 0x359   :  { %v3159_v30 = vpop.eup %3158  ;;  %v1790_v5 = vpack.c.bf16 %v4065_v33, %v4060_v32  ;;  %v1586_v17 = vadd.f32 %v3952_v41, %v1547_v3  ;;  %v1548_v56 = vadd.f32 %v1507_v29, %v4257_v9 }
 0x35a   :  { %v3161_v37 = vpop.eup %3160  ;;  %v1620_v7 = vsub.f32 0.0, %v1588_v26  ;;  %v1589_v14 = vadd.f32 %v3952_v41, %v1550_v46  ;;  %v1708_v11 = vadd.f32 1.0, %v3159_v30 }
 0x35b   :  { %v3163_v6 = vpop.eup %3162  ;;  %v1706_v10 = vadd.f32 1.0, %v3161_v37  ;;  %2757 = vmatprep.mubr.bf16.mxu0 %v1790_v5  ;;  %v1587_v20 = vadd.f32 %v3952_v41, %v1548_v56  ;;  %v1618_v47 = vsub.f32 0.0, %v1586_v17 }
 0x35c   :  { %v3165_v34 = vpop.eup %3164  ;;  %v1709_v44 = vadd.f32 1.0, %v3163_v6  ;;  %2758 = vmatmul.mubr.bf16.gmra.mrb[64].mxu0 %v1791_v15  ;;  %v1682_v12 = vmul.f32 1.442695, %v1620_v7  ;;  %v1621_v31 = vsub.f32 0.0, %v1589_v14 }
 0x35d   :  { %3174 = vrcp.f32 %v1706_v10  ;;  %v1707_v4 = vadd.f32 1.0, %v3165_v34  ;;  %v3167_v22 = vpop.eup %3166  ;;  %v1619_v8 = vsub.f32 0.0, %v1587_v20  ;;  %v1678_v40 = vmul.f32 1.442695, %v1618_v47  ;;  %v2023_v20 = vld [vmem:[%s4240_s8] sm:$0x1] }
 0x35e   :  { %3176 = vrcp.f32 %v1709_v44  ;;  %v3169_v21 = vpop.eup %3168  ;;  %v1684_v49 = vmul.f32 1.442695, %v1621_v31  ;;  %v1712_v54 = vadd.f32 1.0, %v3167_v22  ;;  %v2058_v44 = vlaneseq  ;;  %s3322_s8 = smov [#allocation5]  }
 0x35f   :  { %3178 = vrcp.f32 %v1707_v4  ;;  %v3171_v63 = vpop.eup %3170  ;;  %v1710_v13 = vadd.f32 1.0, %v3169_v21  ;;  %v1680_v52 = vmul.f32 1.442695, %v1619_v8  ;;  %vm2024_vm2 = vcmp.gt.f32.partialorder %v2023_v20, 0.5  ;;  %s2324_s7 = sshll.u32 %s3322_s8, 4  ;;  %s2325_s7 = int_to_ptr.vmem [resolvable:$true] %s2324_s7 }
 0x360   :  { %3180 = vrcp.f32 %v1708_v11  ;;  %v3173_v35 = vpop.eup %3172  ;;  %v1713_v39 = vadd.f32 1.0, %v3171_v63  ;;  %v2059_v4 = vshrl.u32 %v2058_v44, 7  ;;  %v4258_v47 = vmov 0   ;;  %s3292_s27 = scalar_lea.vmem %s2325_s7, 2048  ;;  %p3297_p9 = scmp.lt.s32.totalorder %s2325_s7, %s2325_s7 }
 0x361   :  { %3182 = vpow2.f32 %v1682_v12  ;;  %v1711_v41 = vadd.f32 1.0, %v3173_v35  ;;  %v2057_v22 = vsel %vm2024_vm2, 1, %v4258_v47  ;;  %p3293_p8 = scmp.ne.s32.totalorder %s2325_s7, %s3292_s27  ;;  %p3298_p10 = scmp.lt.s32.totalorder %s3292_s27, %s3292_s27 }
 0x362   :  { %3184 = vrcp.f32 %v1710_v13  ;;  %v2060_v12 = vsub.s32 0, %v2059_v4 }
 0x363   :  { %3186 = vrcp.f32 %v1713_v39  ;;  %p3299_p11 = por %p3298_p10, %p3297_p9 }
 0x364   :  { %3188 = vrcp.f32 %v1711_v41  ;;  %v4118_v31 = vrot.slane %v2057_v22, %v2060_v12 }
 0x365   :  { %3190 = vpow2.f32 %v1678_v40  ;;  %p3300_p12 = pnand %p3299_p11, %p3293_p8 }
 0x366   :  { %3192 = vpow2.f32 %v1684_v49  ;;  %vm2062_vm3 = vcmp.eq.s32.totalorder %v4118_v31, 1 }
 0x367   :  { %v4078_v42 = vpop.eup %3174  ;;  %3194 = vpow2.f32 %v1680_v52 }
 0x368   :  { %v4080_v2 = vpop.eup %3176  ;;  %3196 = vrcp.f32 %v1712_v54 }
 0x369   :  { %v4082_v18 = vpop.eup %3178 }
 0x36a   :  { %v4084_v59 = vpop.eup %3180  ;;  %v1792_v23 = vpack.c.bf16 %v4082_v18, %v4078_v42 }
 0x36b   :  { %v3183_v62 = vpop.eup %3182  ;;  %v1793_v58 = vpack.c.bf16 %v4080_v2, %v4084_v59 }
 0x36c   :  { %v4090_v3 = vpop.eup %3184  ;;  %2761 = vmatprep.mubr.bf16.mxu0 %v1792_v23  ;;  %v1716_v37 = vadd.f32 1.0, %v3183_v62 }
 0x36d   :  { %v4092_v16 = vpop.eup %3186  ;;  %2762 = vmatmul.mubr.bf16.gmra.mrb[68].mxu0 %v1793_v58 }
 0x36e   :  { %v4094_v30 = vpop.eup %3188 }
 0x36f   :  { %v3191_v26 = vpop.eup %3190  ;;  %v1794_v28 = vpack.c.bf16 %v4094_v30, %v4090_v3 }
 0x370   :  { %v3193_v46 = vpop.eup %3192  ;;  %v1714_v29 = vadd.f32 1.0, %v3191_v26 }
 0x371   :  { %v3195_v5 = vpop.eup %3194  ;;  %v1717_v17 = vadd.f32 1.0, %v3193_v46  ;;  %2765 = vmatprep.mubr.bf16.mxu0 %v1794_v28 }
 0x372   :  { %v4098_v9 = vpop.eup %3196  ;;  %3198 = vrcp.f32 %v1714_v29  ;;  %v1715_v56 = vadd.f32 1.0, %v3195_v5 }
 0x373   :  { %3200 = vrcp.f32 %v1717_v17  ;;  %v1795_v15 = vpack.c.bf16 %v4092_v16, %v4098_v9 }
 0x374   :  { %3202 = vrcp.f32 %v1715_v56 }
 0x375   :  { %3204 = vrcp.f32 %v1716_v37  ;;  %2766 = vmatmul.mubr.bf16.gmra.mrb[72].mxu0 %v1795_v15 }
 0x37c   :  { %v4102_v6 = vpop.eup %3198 }
 0x37d   :  { %v4104_v10 = vpop.eup %3200 }
 0x37e   :  { %v4106_v7 = vpop.eup %3202 }
 0x37f   :  { %v4108_v14 = vpop.eup %3204  ;;  %v1796_v34 = vpack.c.bf16 %v4106_v7, %v4102_v6 }
 0x380   :  { %v1797_v11 = vpack.c.bf16 %v4104_v10, %v4108_v14 }
 0x381   :  { %2769 = vmatprep.mubr.bf16.mxu0 %v1796_v34 }
 0x382   :  { %2770 = vmatmul.mubr.bf16.gmra.mrb[76].mxu0 %v1797_v11 }
 0x3e9   :  { %v2743_v21 = vpop.f32.mrb[48].mxu0 }
 0x3ea   :  { %v2027_v8 = vmax.f32 %v2743_v21, 1e-12  ;;  %v1896_v63 = vpop.f32.mrb[49].mxu0 }
 0x3eb   :  { %v2025_v13 = vmax.f32 %v1896_v63, 1e-12  ;;  %v2744_v35 = vpop.f32.mrb[50].mxu0 }
 0x3ec   :  { %v2065_v39 = vsel %vm2062_vm3, %v2027_v8, 1.0  ;;  %v2028_v40 = vmax.f32 %v2744_v35, 1e-12  ;;  %v1899_v41 = vpop.f32.mrb[51].mxu0 }
 0x3ed   :  { %3206 = vrcp.f32 %v2065_v39  ;;  %v2063_v49 = vsel %vm2062_vm3, %v2025_v13, 1.0  ;;  %v2026_v52 = vmax.f32 %v1899_v41, 1e-12 }
 0x3ee   :  { %3208 = vrcp.f32 %v2063_v49  ;;  %v2066_v54 = vsel %vm2062_vm3, %v2028_v40, 1.0 }
 0x3ef   :  { %3210 = vrcp.f32 %v2066_v54  ;;  %v2064_v23 = vsel %vm2062_vm3, %v2026_v52, 1.0 }
 0x3f0   :  { %3212 = vrcp.f32 %v2064_v23 }
 0x3f7   :  { %v3207_v62 = vpop.eup %3206 }
 0x3f8   :  { %v3209_v58 = vpop.eup %3208  ;;  %v2129_v46 = vmul.f32 %v3207_v62, %v3970_v60 }
 0x3f9   :  { %v3211_v26 = vpop.eup %3210  ;;  %v2127_v37 = vmul.f32 %v3209_v58, %v3972_v27 }
 0x3fa   :  { %v3213_v28 = vpop.eup %3212  ;;  %v2130_v29 = vmul.f32 %v3211_v26, %v3974_v25  ;;  %v2747_v5 = vpop.f32.mrb[52].mxu0 }
 0x3fb   :  { %v2128_v17 = vmul.f32 %v3213_v28, %v3976_v1  ;;  %v2031_v56 = vmax.f32 %v2747_v5, 1e-12  ;;  %v1912_v15 = vpop.f32.mrb[53].mxu0 }
 0x3fc   :  { %v2470_v34 = vpack.c.bf16 %v2130_v29, %v2129_v46  ;;  %v2029_v11 = vmax.f32 %v1912_v15, 1e-12  ;;  %v2748_v44 = vpop.f32.mrb[54].mxu0 }
 0x3fd   :  { %v2465_v20 = vpack.c.bf16 %v2128_v17, %v2127_v37  ;;  %v2069_v4 = vsel %vm2062_vm3, %v2031_v56, 1.0  ;;  %v2032_v12 = vmax.f32 %v2748_v44, 1e-12  ;;  %v1915_v47 = vpop.f32.mrb[55].mxu0 }
 0x3fe   :  { %2542 = vst [vmem:[#allocation5 + $0x8] sm:$0xff] %v2470_v34   ;;  %3214 = vrcp.f32 %v2069_v4  ;;  %v2067_v60 = vsel %vm2062_vm3, %v2029_v11, 1.0  ;;  %v2030_v25 = vmax.f32 %v1915_v47, 1e-12 }
 0x3ff   :  { %2466 = vst [vmem:[#allocation5] sm:$0xff] %v2465_v20   ;;  %3216 = vrcp.f32 %v2067_v60  ;;  %v2070_v27 = vsel %vm2062_vm3, %v2032_v12, 1.0 }
 0x400   :  { %3218 = vrcp.f32 %v2070_v27  ;;  %v2068_v1 = vsel %vm2062_vm3, %v2030_v25, 1.0 }
 0x401   :  { %3220 = vrcp.f32 %v2068_v1 }
 0x408   :  { %v3215_v22 = vpop.eup %3214 }
 0x409   :  { %v3217_v21 = vpop.eup %3216  ;;  %v2133_v13 = vmul.f32 %v3215_v22, %v3996_v55 }
 0x40a   :  { %v3219_v8 = vpop.eup %3218  ;;  %v2131_v39 = vmul.f32 %v3217_v21, %v3990_v61 }
 0x40b   :  { %v3221_v63 = vpop.eup %3220  ;;  %v2134_v35 = vmul.f32 %v3219_v8, %v3992_v48 }
 0x40c   :  { %v2132_v40 = vmul.f32 %v3221_v63, %v3994_v51 }
 0x40d   :  { %v2480_v41 = vpack.c.bf16 %v2134_v35, %v2133_v13  ;;  %v2751_v49 = vpop.f32.mrb[56].mxu0 }
 0x40e   :  { %v2475_v52 = vpack.c.bf16 %v2132_v40, %v2131_v39  ;;  %v2035_v54 = vmax.f32 %v2751_v49, 1e-12  ;;  %v1928_v23 = vpop.f32.mrb[57].mxu0 }
 0x40f   :  { %2544 = vst [vmem:[#allocation5 + $0x18] sm:$0xff] %v2480_v41   ;;  %v2033_v62 = vmax.f32 %v1928_v23, 1e-12  ;;  %v2752_v58 = vpop.f32.mrb[58].mxu0 }
 0x410   :  { %2543 = vst [vmem:[#allocation5 + $0x10] sm:$0xff] %v2475_v52   ;;  %v2073_v26 = vsel %vm2062_vm3, %v2035_v54, 1.0  ;;  %v2036_v28 = vmax.f32 %v2752_v58, 1e-12  ;;  %v1931_v55 = vpop.f32.mrb[59].mxu0 }
 0x411   :  { %3222 = vrcp.f32 %v2073_v26  ;;  %v2071_v61 = vsel %vm2062_vm3, %v2033_v62, 1.0  ;;  %v2034_v48 = vmax.f32 %v1931_v55, 1e-12 }
 0x412   :  { %3224 = vrcp.f32 %v2071_v61  ;;  %v2074_v51 = vsel %vm2062_vm3, %v2036_v28, 1.0 }
 0x413   :  { %3226 = vrcp.f32 %v2074_v51  ;;  %v2072_v46 = vsel %vm2062_vm3, %v2034_v48, 1.0 }
 0x414   :  { %3228 = vrcp.f32 %v2072_v46 }
 0x41b   :  { %v3223_v29 = vpop.eup %3222 }
 0x41c   :  { %v3225_v5 = vpop.eup %3224  ;;  %v2137_v56 = vmul.f32 %v3223_v29, %v4023_v50 }
 0x41d   :  { %v3227_v37 = vpop.eup %3226  ;;  %v2135_v34 = vmul.f32 %v3225_v5, %v4012_v0 }
 0x41e   :  { %v3229_v17 = vpop.eup %3228  ;;  %v2138_v15 = vmul.f32 %v3227_v37, %v4016_v19 }
 0x41f   :  { %v2136_v11 = vmul.f32 %v3229_v17, %v4020_v24  ;;  %v2755_v44 = vpop.f32.mrb[60].mxu0 }
 0x420   :  { %v2490_v20 = vpack.c.bf16 %v2138_v15, %v2137_v56  ;;  %v2039_v4 = vmax.f32 %v2755_v44, 1e-12  ;;  %v1944_v12 = vpop.f32.mrb[61].mxu0 }
 0x421   :  { %v2485_v47 = vpack.c.bf16 %v2136_v11, %v2135_v34  ;;  %v2037_v60 = vmax.f32 %v1944_v12, 1e-12  ;;  %v2756_v25 = vpop.f32.mrb[62].mxu0 }
 0x422   :  { %2546 = vst [vmem:[#allocation5 + $0x28] sm:$0xff] %v2490_v20   ;;  %v2077_v27 = vsel %vm2062_vm3, %v2039_v4, 1.0  ;;  %v2040_v1 = vmax.f32 %v2756_v25, 1e-12  ;;  %v1947_v22 = vpop.f32.mrb[63].mxu0 }
 0x423   :  { %2545 = vst [vmem:[#allocation5 + $0x20] sm:$0xff] %v2485_v47   ;;  %3230 = vrcp.f32 %v2077_v27  ;;  %v2075_v0 = vsel %vm2062_vm3, %v2037_v60, 1.0  ;;  %v2038_v19 = vmax.f32 %v1947_v22, 1e-12 }
 0x424   :  { %3232 = vrcp.f32 %v2075_v0  ;;  %v2078_v24 = vsel %vm2062_vm3, %v2040_v1, 1.0 }
 0x425   :  { %3234 = vrcp.f32 %v2078_v24  ;;  %v2076_v50 = vsel %vm2062_vm3, %v2038_v19, 1.0 }
 0x426   :  { %3236 = vrcp.f32 %v2076_v50 }
 0x42d   :  { %v3231_v21 = vpop.eup %3230 }
 0x42e   :  { %v3233_v8 = vpop.eup %3232  ;;  %v2141_v39 = vmul.f32 %v3231_v21, %v4031_v53 }
 0x42f   :  { %v3235_v63 = vpop.eup %3234  ;;  %v2759_v13 = vpop.f32.mrb[64].mxu0  ;;  %v2139_v52 = vmul.f32 %v3233_v8, %v4034_v38 }
 0x430   :  { %v3237_v35 = vpop.eup %3236  ;;  %v2142_v40 = vmul.f32 %v3235_v63, %v4038_v45  ;;  %v2043_v41 = vmax.f32 %v2759_v13, 1e-12  ;;  %v1960_v49 = vpop.f32.mrb[65].mxu0 }
 0x431   :  { %v2140_v54 = vmul.f32 %v3237_v35, %v4042_v36  ;;  %v2041_v23 = vmax.f32 %v1960_v49, 1e-12  ;;  %v2760_v62 = vpop.f32.mrb[66].mxu0 }
 0x432   :  { %v2500_v58 = vpack.c.bf16 %v2142_v40, %v2141_v39  ;;  %v2081_v26 = vsel %vm2062_vm3, %v2043_v41, 1.0  ;;  %v2044_v28 = vmax.f32 %v2760_v62, 1e-12  ;;  %v1963_v55 = vpop.f32.mrb[67].mxu0 }
 0x433   :  { %v2495_v61 = vpack.c.bf16 %v2140_v54, %v2139_v52  ;;  %3238 = vrcp.f32 %v2081_v26  ;;  %v2079_v53 = vsel %vm2062_vm3, %v2041_v23, 1.0  ;;  %v2042_v45 = vmax.f32 %v1963_v55, 1e-12 }
 0x434   :  { %2548 = vst [vmem:[#allocation5 + $0x38] sm:$0xff] %v2500_v58   ;;  %3240 = vrcp.f32 %v2079_v53  ;;  %v2082_v38 = vsel %vm2062_vm3, %v2044_v28, 1.0 }
 0x435   :  { %2547 = vst [vmem:[#allocation5 + $0x30] sm:$0xff] %v2495_v61   ;;  %3242 = vrcp.f32 %v2082_v38  ;;  %v2080_v36 = vsel %vm2062_vm3, %v2042_v45, 1.0 }
 0x436   :  { %3244 = vrcp.f32 %v2080_v36 }
 0x43d   :  { %v3239_v48 = vpop.eup %3238 }
 0x43e   :  { %v3241_v51 = vpop.eup %3240  ;;  %v2145_v5 = vmul.f32 %v3239_v48, %v4058_v43 }
 0x43f   :  { %v3243_v46 = vpop.eup %3242  ;;  %v2143_v56 = vmul.f32 %v3241_v51, %v4060_v32 }
 0x440   :  { %v3245_v29 = vpop.eup %3244  ;;  %v2146_v37 = vmul.f32 %v3243_v46, %v4062_v57  ;;  %v2763_v17 = vpop.f32.mrb[68].mxu0 }
 0x441   :  { %v2144_v15 = vmul.f32 %v3245_v29, %v4065_v33  ;;  %v2047_v34 = vmax.f32 %v2763_v17, 1e-12  ;;  %v1976_v11 = vpop.f32.mrb[69].mxu0 }
 0x442   :  { %v2510_v44 = vpack.c.bf16 %v2146_v37, %v2145_v5  ;;  %v2045_v20 = vmax.f32 %v1976_v11, 1e-12  ;;  %v2764_v4 = vpop.f32.mrb[70].mxu0 }
 0x443   :  { %v2505_v12 = vpack.c.bf16 %v2144_v15, %v2143_v56  ;;  %v2085_v47 = vsel %vm2062_vm3, %v2047_v34, 1.0  ;;  %v2048_v60 = vmax.f32 %v2764_v4, 1e-12  ;;  %v1979_v25 = vpop.f32.mrb[71].mxu0 }
 0x444   :  { %2550 = vst [vmem:[#allocation5 + $0x48] sm:$0xff] %v2510_v44   ;;  %3246 = vrcp.f32 %v2085_v47  ;;  %v2083_v43 = vsel %vm2062_vm3, %v2045_v20, 1.0  ;;  %v2046_v57 = vmax.f32 %v1979_v25, 1e-12 }
 0x445   :  { %2549 = vst [vmem:[#allocation5 + $0x40] sm:$0xff] %v2505_v12   ;;  %3248 = vrcp.f32 %v2083_v43  ;;  %v2086_v32 = vsel %vm2062_vm3, %v2048_v60, 1.0 }
 0x446   :  { %3250 = vrcp.f32 %v2086_v32  ;;  %v2084_v33 = vsel %vm2062_vm3, %v2046_v57, 1.0 }
 0x447   :  { %3252 = vrcp.f32 %v2084_v33 }
 0x448   :  { %v2767_v27 = vpop.f32.mrb[72].mxu0 }
 0x449   :  { %v2051_v1 = vmax.f32 %v2767_v27, 1e-12  ;;  %v1992_v22 = vpop.f32.mrb[73].mxu0 }
 0x44a   :  { %v2049_v0 = vmax.f32 %v1992_v22, 1e-12  ;;  %v2768_v19 = vpop.f32.mrb[74].mxu0 }
 0x44b   :  { %v2089_v24 = vsel %vm2062_vm3, %v2051_v1, 1.0  ;;  %v2052_v50 = vmax.f32 %v2768_v19, 1e-12  ;;  %v1995_v21 = vpop.f32.mrb[75].mxu0 }
 0x44c   :  { %3254 = vrcp.f32 %v2089_v24  ;;  %v2087_v8 = vsel %vm2062_vm3, %v2049_v0, 1.0  ;;  %v2050_v63 = vmax.f32 %v1995_v21, 1e-12 }
 0x44d   :  { %3256 = vrcp.f32 %v2087_v8  ;;  %v2090_v13 = vsel %vm2062_vm3, %v2052_v50, 1.0 }
 0x44e   :  { %v3247_v35 = vpop.eup %3246  ;;  %3258 = vrcp.f32 %v2090_v13  ;;  %v2088_v39 = vsel %vm2062_vm3, %v2050_v63, 1.0 }
 0x44f   :  { %v3249_v40 = vpop.eup %3248  ;;  %3260 = vrcp.f32 %v2088_v39  ;;  %v2149_v52 = vmul.f32 %v3247_v35, %v4084_v59 }
 0x450   :  { %v3251_v41 = vpop.eup %3250  ;;  %v2147_v23 = vmul.f32 %v3249_v40, %v4078_v42 }
 0x451   :  { %v3253_v49 = vpop.eup %3252  ;;  %v2150_v54 = vmul.f32 %v3251_v41, %v4080_v2 }
 0x452   :  { %v2148_v62 = vmul.f32 %v3253_v49, %v4082_v18 }
 0x453   :  { %v2520_v58 = vpack.c.bf16 %v2150_v54, %v2149_v52 }
 0x454   :  { %v2515_v26 = vpack.c.bf16 %v2148_v62, %v2147_v23 }
 0x455   :  { %2552 = vst [vmem:[#allocation5 + $0x58] sm:$0xff] %v2520_v58   ;;  %v2771_v28 = vpop.f32.mrb[76].mxu0 }
 0x456   :  { %v3255_v55 = vpop.eup %3254  ;;  %2551 = vst [vmem:[#allocation5 + $0x50] sm:$0xff] %v2515_v26   ;;  %v2055_v61 = vmax.f32 %v2771_v28, 1e-12  ;;  %v2008_v53 = vpop.f32.mrb[77].mxu0 }
 0x457   :  { %v3257_v45 = vpop.eup %3256  ;;  %v2053_v38 = vmax.f32 %v2008_v53, 1e-12  ;;  %v2772_v36 = vpop.f32.mrb[78].mxu0  ;;  %v2153_v59 = vmul.f32 %v3255_v55, %v4098_v9 }
 0x458   :  { %v3259_v48 = vpop.eup %3258  ;;  %v2093_v2 = vsel %vm2062_vm3, %v2055_v61, 1.0  ;;  %v2056_v42 = vmax.f32 %v2772_v36, 1e-12  ;;  %v2011_v51 = vpop.f32.mrb[79].mxu0  ;;  %v2151_v37 = vmul.f32 %v3257_v45, %v4090_v3 }
 0x459   :  { %v3261_v18 = vpop.eup %3260  ;;  %v2154_v46 = vmul.f32 %v3259_v48, %v4092_v16  ;;  %3262 = vrcp.f32 %v2093_v2  ;;  %v2091_v29 = vsel %vm2062_vm3, %v2053_v38, 1.0  ;;  %v2054_v5 = vmax.f32 %v2011_v51, 1e-12 }
 0x45a   :  { %v2152_v17 = vmul.f32 %v3261_v18, %v4094_v30  ;;  %3264 = vrcp.f32 %v2091_v29  ;;  %v2094_v9 = vsel %vm2062_vm3, %v2056_v42, 1.0 }
 0x45b   :  { %v2530_v56 = vpack.c.bf16 %v2154_v46, %v2153_v59  ;;  %3266 = vrcp.f32 %v2094_v9  ;;  %v2092_v15 = vsel %vm2062_vm3, %v2054_v5, 1.0 }
 0x45c   :  { %v2525_v34 = vpack.c.bf16 %v2152_v17, %v2151_v37  ;;  %3268 = vrcp.f32 %v2092_v15 }
 0x45d   :  { %2554 = vst [vmem:[#allocation5 + $0x68] sm:$0xff] %v2530_v56  }
 0x45e   :  { %2553 = vst [vmem:[#allocation5 + $0x60] sm:$0xff] %v2525_v34  }
 0x463   :  { %v3263_v16 = vpop.eup %3262 }
 0x464   :  { %v3265_v11 = vpop.eup %3264  ;;  %v2157_v3 = vmul.f32 %v3263_v16, %v4108_v14 }
 0x465   :  { %v3267_v44 = vpop.eup %3266  ;;  %v2155_v4 = vmul.f32 %v3265_v11, %v4102_v6 }
 0x466   :  { %v3269_v20 = vpop.eup %3268  ;;  %v2158_v30 = vmul.f32 %v3267_v44, %v4104_v10 }
 0x467   :  { %v2156_v12 = vmul.f32 %v3269_v20, %v4106_v7 }
 0x468   :  { %v2540_v31 = vpack.c.bf16 %v2158_v30, %v2157_v3 }
 0x469   :  { %v2535_v47 = vpack.c.bf16 %v2156_v12, %v2155_v4 }
 0x46a   :  { %2556 = vst [vmem:[#allocation5 + $0x78] sm:$0xff] %v2540_v31  }
 0x46b   :  { %2555 = vst [vmem:[#allocation5 + $0x70] sm:$0xff] %v2535_v47  }
 0x46c   :  { %3303 = shalt.err (!%p3300_p12)
}
 0x46d   :  { %s3304_s29 = scalar_lea.hbm %s4241_s9, 2048 }
 0x46e   :  { %p3305_p13 = scmp.ne.s32.totalorder %s4241_s9, %s3304_s29  ;;  %p3308_p0 = scmp.lt.u32.totalorder %s3304_s29, %s4241_s9 }
 0x470   :  { %p3310_p1 = pnand %p3308_p0, %p3305_p13 }
 0x472   :  { %3313 = shalt.err (!%p3310_p1)
}
 0x473   :  { %2330 = dma.vmem_to_hbm [thread:$0]  %s2325_s7, 2048, %s4241_s9, [#allocation4], %s3319_s19, %s3319_s19, %s3320_s20  }
 0x474   :  { %3316 = dma.done.wait [#allocation4], 2048  }
 0x475   :  { %3317 = vsyncadd [#allocation4], 4294965248 }
 0x476   :  { %2334 = vsyncpa [#allocation3], 1 }
 0x477   :  { %2335 = vsyncpa [#allocation4], 1 }

</bundles_post_ra>
